<compile_context>
chip_gen: v7x
topology: tpu7x:2x2x1
jax: 0.10.0
libtpu: 0.0.40
codegen_flags: <defaults>
</compile_context>

<pallas_src>
import math

import jax
import jax.numpy as jnp
from jax import lax
from jax.experimental import pallas as pl
from jax.experimental.pallas import tpu as pltpu

LANE = 128
SUBLANE = 8


def _round_up(x, m):
    return ((x + m - 1) // m) * m


def _choose_chunk(T, max_chunk=32):
    """Largest divisor of T that is <= max_chunk (inner loop is fully unrolled)."""
    tc = min(T, max_chunk)
    while T % tc != 0:
        tc -= 1
    return tc


def lstm_chunk_kernel(x_ref, h0_ref, c0_ref, w_ih_ref, w_hh_ref, b_ref,
                      w_ho_ref, b_ho_ref,
                      out_ref, hT_ref, cT_ref,
                      xproj_scr, hbuf_scr):
    """One chunk of TC timesteps: LSTMCell recurrence + batched h2o/log-softmax.

    x_ref:    [TC, BB, I]   bf16 streamed input chunk
    h0_ref:   [BB, Hp]      f32 initial hidden (read only at chunk 0)
    c0_ref:   [BB, Hp]      f32 initial cell   (read only at chunk 0)
    w_ih_ref: [I, 4*Hp]     bf16 gate-padded input weights  (gate order i,f,g,o)
    w_hh_ref: [Hp, 4*Hp]    bf16 gate-padded hidden weights
    b_ref:    [1, 4*Hp]     f32 fused LSTM bias (b_ih + b_hh), zero in pad lanes
    w_ho_ref: [Hp, Op]      bf16 h2o weights (pad rows/cols zero)
    b_ho_ref: [1, Op]       f32 h2o bias (-1e30 in pad lanes -> exp() == 0)
    out_ref:  [TC, BB, Op]  per-step log-softmax output
    hT_ref:   [BB, Hp]      resident hidden carry / final hidden
    cT_ref:   [BB, Hp]      resident cell carry   / final cell
    xproj_scr:[TC, BB, 4Hp] f32 VMEM scratch (hoisted input projection)
    hbuf_scr: [TC, BB, Hp]  bf16 VMEM scratch (h_new per step, feeds h2o matmul)
    """
    TC, BB, I = x_ref.shape
    Hp = hT_ref.shape[-1]
    Op = out_ref.shape[-1]
    t_chunk = pl.program_id(1)

    @pl.when(t_chunk == 0)
    def _():
        hT_ref[...] = h0_ref[...]
        cT_ref[...] = c0_ref[...]

    # --- (1) Batched input projection for the whole chunk (off the serial path).
    x_all = x_ref[...].reshape(TC * BB, I)                               # bf16
    xproj = (jnp.dot(x_all, w_ih_ref[...], preferred_element_type=jnp.float32)
             + b_ref[...])                                               # bias hoisted
    xproj_scr[...] = xproj.reshape(TC, BB, 4 * Hp)

    # --- (2) Serial recurrence: only h @ W_hh + elementwise on the critical path.
    w_hh = w_hh_ref[...]                                                 # bf16, loaded once

    def step(t, carry):
        h, c = carry                                                     # f32 carries
        gates = xproj_scr[t] + jnp.dot(h.astype(jnp.bfloat16), w_hh,
                                       preferred_element_type=jnp.float32)
        # Hp is a multiple of 128 -> each gate slice is vreg (128-lane) aligned.
        i_g = jax.nn.sigmoid(gates[:, 0 * Hp:1 * Hp])
        f_g = jax.nn.sigmoid(gates[:, 1 * Hp:2 * Hp])
        g_g = jnp.tanh(gates[:, 2 * Hp:3 * Hp])
        o_g = jax.nn.sigmoid(gates[:, 3 * Hp:4 * Hp])
        c_new = f_g * c + i_g * g_g
        h_new = o_g * jnp.tanh(c_new)
        hbuf_scr[t] = h_new.astype(hbuf_scr.dtype)
        return (h_new, c_new)

    hT, cT = lax.fori_loop(0, TC, step, (hT_ref[...], cT_ref[...]), unroll=True)
    hT_ref[...] = hT
    cT_ref[...] = cT

    # --- (3) Batched h2o + LogSoftmax(dim=1) for the whole chunk.
    # Padded logit lanes carry -1e30 bias (and zero weight columns), so the
    # max/sum reductions only see real classes; padding is sliced off outside.
    h_all = hbuf_scr[...].reshape(TC * BB, Hp)                           # bf16
    logits = (jnp.dot(h_all, w_ho_ref[...], preferred_element_type=jnp.float32)
              + b_ho_ref[...])
    m = jnp.max(logits, axis=-1, keepdims=True)
    z = logits - m
    lse = jnp.log(jnp.sum(jnp.exp(z), axis=-1, keepdims=True))
    out_ref[...] = (z - lse).reshape(TC, BB, Op).astype(out_ref.dtype)


@jax.jit
def lstm_forward_seq(x_seq, h0, c0, w_ih, w_hh, b_ih, b_hh, w_ho, b_ho):
    """Applies the module's forward pass for each timestep of x_seq, carrying
    (hidden, cell). Params are in torch layout:
      w_ih [4H, I], w_hh [4H, H], b_ih/b_hh [4H], w_ho [O, H], b_ho [O].
    Returns (per-step log-probs [T, B, O], final hidden [B, H], final cell [B, H]).
    """
    T, B, I = x_seq.shape
    H = h0.shape[-1]
    O = w_ho.shape[0]

    Bp = _round_up(max(B, SUBLANE), SUBLANE)      # fill sublanes
    Hp = _round_up(max(H, LANE), LANE)            # per-gate lane padding (vreg-aligned gates)
    Op = _round_up(max(O, LANE), LANE)            # lane-dense output stores
    TC = _choose_chunk(T)                         # timesteps per grid step
    BB = SUBLANE                                  # batch rows per grid block ("parallel" axis)

    f32, bf16 = jnp.float32, jnp.bfloat16

    # ---- Trace-time parameter packing (outside the kernel). Gate order i,f,g,o.
    # Per-gate hidden dim padded to Hp; padded weight rows/cols and bias are zero.
    w_ih_g = w_ih.astype(f32).reshape(4, H, I)
    w_ih_p = jnp.zeros((4, Hp, I), f32).at[:, :H, :].set(w_ih_g)
    w_ih_t = jnp.transpose(w_ih_p, (2, 0, 1)).reshape(I, 4 * Hp).astype(bf16)

    w_hh_g = w_hh.astype(f32).reshape(4, H, H)
    w_hh_p = jnp.zeros((4, Hp, Hp), f32).at[:, :H, :H].set(w_hh_g)
    w_hh_t = jnp.transpose(w_hh_p, (2, 0, 1)).reshape(Hp, 4 * Hp).astype(bf16)

    b_g = (b_ih + b_hh).astype(f32).reshape(4, H)
    b_p = jnp.zeros((4, Hp), f32).at[:, :H].set(b_g).reshape(1, 4 * Hp)

    w_ho_t = jnp.zeros((Hp, Op), f32).at[:H, :O].set(w_ho.T.astype(f32)).astype(bf16)
    b_ho_p = jnp.full((1, Op), -1e30, f32).at[0, :O].set(b_ho.astype(f32))

    x_p = jnp.zeros((T, Bp, I), bf16).at[:, :B].set(x_seq.astype(bf16))
    h0_p = jnp.zeros((Bp, Hp), f32).at[:B, :H].set(h0.astype(f32))
    c0_p = jnp.zeros((Bp, Hp), f32).at[:B, :H].set(c0.astype(f32))

    grid_spec = pltpu.PrefetchScalarGridSpec(
        num_scalar_prefetch=0,
        grid=(Bp // BB, T // TC),                 # (batch blocks, time chunks)
        in_specs=[
            pl.BlockSpec((TC, BB, I), lambda b, t: (t, b, 0)),      # x chunk (pipelined)
            pl.BlockSpec((BB, Hp), lambda b, t: (b, 0)),            # h0
            pl.BlockSpec((BB, Hp), lambda b, t: (b, 0)),            # c0
            pl.BlockSpec((I, 4 * Hp), lambda b, t: (0, 0)),         # w_ih (resident)
            pl.BlockSpec((Hp, 4 * Hp), lambda b, t: (0, 0)),        # w_hh (resident)
            pl.BlockSpec((1, 4 * Hp), lambda b, t: (0, 0)),         # fused LSTM bias
            pl.BlockSpec((Hp, Op), lambda b, t: (0, 0)),            # w_h2o (resident)
            pl.BlockSpec((1, Op), lambda b, t: (0, 0)),             # b_h2o (padded)
        ],
        out_specs=[
            pl.BlockSpec((TC, BB, Op), lambda b, t: (t, b, 0)),     # per-step log-probs
            pl.BlockSpec((BB, Hp), lambda b, t: (b, 0)),            # hidden carry / final
            pl.BlockSpec((BB, Hp), lambda b, t: (b, 0)),            # cell carry / final
        ],
        scratch_shapes=[
            pltpu.VMEM((TC, BB, 4 * Hp), jnp.float32),   # hoisted input projection
            pltpu.VMEM((TC, BB, Hp), jnp.bfloat16),      # buffered h_new for batched h2o
        ],
    )

    out_p, hT_p, cT_p = pl.pallas_call(
        lstm_chunk_kernel,
        out_shape=(
            jax.ShapeDtypeStruct((T, Bp, Op), jnp.float32),
            jax.ShapeDtypeStruct((Bp, Hp), jnp.float32),
            jax.ShapeDtypeStruct((Bp, Hp), jnp.float32),
        ),
        grid_spec=grid_spec,
        compiler_params=pltpu.CompilerParams(
            # batch blocks are independent (v7x: second TC); time chunks carry state.
            dimension_semantics=("parallel", "arbitrary")),
    )(x_p, h0_p, c0_p, w_ih_t, w_hh_t, b_p, w_ho_t, b_ho_p)

    return out_p[:, :B, :O], hT_p[:B, :H], cT_p[:B, :H]


def reference_forward_seq(x_seq, h0, c0, w_ih, w_hh, b_ih, b_hh, w_ho, b_ho):
    """Pure-JAX (f32) reference: loop the module's forward, carrying (hidden, cell)."""
    H = h0.shape[-1]

    def step(carry, x):
        h, c = carry
        gates = x @ w_ih.T + b_ih + h @ w_hh.T + b_hh
        i = jax.nn.sigmoid(gates[:, 0 * H:1 * H])
        f = jax.nn.sigmoid(gates[:, 1 * H:2 * H])
        g = jnp.tanh(gates[:, 2 * H:3 * H])
        o = jax.nn.sigmoid(gates[:, 3 * H:4 * H])
        c_new = f * c + i * g
        h_new = o * jnp.tanh(c_new)
        out = jax.nn.log_softmax(h_new @ w_ho.T + b_ho, axis=1)
        return (h_new, c_new), out

    (hT, cT), outs = jax.lax.scan(step, (h0, c0), x_seq)
    return outs, hT, cT


if __name__ == "__main__":
    # Small shapes consistent with the module's forward.
    T = 8
    batch = 2
    input_size = 16
    hidden_size = 32
    output_size = 8

    key = jax.random.PRNGKey(0)
    ks = jax.random.split(key, 7)

    x_seq = jax.random.normal(ks[0], (T, batch, input_size), dtype=jnp.float32)
    h0 = jnp.zeros((batch, hidden_size), dtype=jnp.float32)   # initHidden(): zeros
    c0 = jnp.ones((batch, hidden_size), dtype=jnp.float32)    # initCell(): ones

    # torch default init: U(-1/sqrt(hidden_size), 1/sqrt(hidden_size))
    k_lstm = 1.0 / math.sqrt(hidden_size)
    w_ih = jax.random.uniform(ks[1], (4 * hidden_size, input_size),
                              minval=-k_lstm, maxval=k_lstm, dtype=jnp.float32)
    w_hh = jax.random.uniform(ks[2], (4 * hidden_size, hidden_size),
                              minval=-k_lstm, maxval=k_lstm, dtype=jnp.float32)
    b_ih = jax.random.uniform(ks[3], (4 * hidden_size,),
                              minval=-k_lstm, maxval=k_lstm, dtype=jnp.float32)
    b_hh = jax.random.uniform(ks[4], (4 * hidden_size,),
                              minval=-k_lstm, maxval=k_lstm, dtype=jnp.float32)
    k_h2o = 1.0 / math.sqrt(hidden_size)
    w_ho = jax.random.uniform(ks[5], (output_size, hidden_size),
                              minval=-k_h2o, maxval=k_h2o, dtype=jnp.float32)
    b_ho = jax.random.uniform(ks[6], (output_size,),
                              minval=-k_h2o, maxval=k_h2o, dtype=jnp.float32)

    out, hT, cT = lstm_forward_seq(x_seq, h0, c0, w_ih, w_hh, b_ih, b_hh, w_ho, b_ho)
    jax.block_until_ready((out, hT, cT))

    out_ref, hT_ref, cT_ref = reference_forward_seq(
        x_seq, h0, c0, w_ih, w_hh, b_ih, b_hh, w_ho, b_ho)

    assert out.shape == (T, batch, output_size)
    assert hT.shape == (batch, hidden_size)
    assert cT.shape == (batch, hidden_size)
    assert bool(jnp.all(jnp.isfinite(out)))
    # Matmul operands are bf16 on the MXU (elementwise / carries stay f32), so
    # compare against the f32 reference with a correspondingly relaxed tolerance.
    assert jnp.allclose(out, out_ref, atol=2e-2, rtol=2e-2)
    assert jnp.allclose(hT, hT_ref, atol=2e-2, rtol=2e-2)
    assert jnp.allclose(cT, cT_ref, atol=2e-2, rtol=2e-2)

    print("KERNEL_OK")
</pallas_src>

<mosaic_0001>
module attributes {stable_mosaic.version = 11 : i64} {
  func.func @lstm_chunk_kernel(%arg0: i32, %arg1: i32, %arg2: memref<8x8x16xbf16, #tpu.memory_space<vmem>>, %arg3: memref<8x128xf32, #tpu.memory_space<vmem>>, %arg4: memref<8x128xf32, #tpu.memory_space<vmem>>, %arg5: memref<16x512xbf16, #tpu.memory_space<vmem>>, %arg6: memref<128x512xbf16, #tpu.memory_space<vmem>>, %arg7: memref<1x512xf32, #tpu.memory_space<vmem>>, %arg8: memref<128x128xbf16, #tpu.memory_space<vmem>>, %arg9: memref<1x128xf32, #tpu.memory_space<vmem>>, %arg10: memref<8x8x128xf32, #tpu.memory_space<vmem>>, %arg11: memref<8x128xf32, #tpu.memory_space<vmem>>, %arg12: memref<8x128xf32, #tpu.memory_space<vmem>>, %arg13: memref<8x8x512xf32, #tpu.memory_space<vmem>>, %arg14: memref<8x8x128xbf16, #tpu.memory_space<vmem>>) attributes {dimension_semantics = [#tpu.dimension_semantics<parallel>, #tpu.dimension_semantics<arbitrary>], iteration_bounds = array<i64: 1, 1>, scalar_prefetch = 0 : i64, scratch_operands = 2 : i64, tpu.core_type = #tpu.core_type<tc>, window_params = [{transform_indices = @transform_0, window_bounds = array<i64: 8, 8, 16>}, {transform_indices = @transform_1, window_bounds = array<i64: 8, 128>}, {transform_indices = @transform_2, window_bounds = array<i64: 8, 128>}, {pipeline_mode = #tpu.pipeline_mode<synchronous>, transform_indices = @transform_3, window_bounds = array<i64: 16, 512>}, {pipeline_mode = #tpu.pipeline_mode<synchronous>, transform_indices = @transform_4, window_bounds = array<i64: 128, 512>}, {pipeline_mode = #tpu.pipeline_mode<synchronous>, transform_indices = @transform_5, window_bounds = array<i64: 1, 512>}, {pipeline_mode = #tpu.pipeline_mode<synchronous>, transform_indices = @transform_6, window_bounds = array<i64: 128, 128>}, {pipeline_mode = #tpu.pipeline_mode<synchronous>, transform_indices = @transform_7, window_bounds = array<i64: 1, 128>}, {transform_indices = @transform_8, window_bounds = array<i64: 8, 8, 128>}, {transform_indices = @transform_9, window_bounds = array<i64: 8, 128>}, {transform_indices = @transform_10, window_bounds = array<i64: 8, 128>}]} {
    %c0_i32 = arith.constant 0 : i32
    %0 = arith.cmpi eq, %arg1, %c0_i32 : i32
    %1 = arith.extui %0 : i1 to i32
    %c0_i32_0 = arith.constant 0 : i32
    %2 = arith.cmpi ne, %1, %c0_i32_0 : i32
    scf.if %2 {
      %c0_98 = arith.constant 0 : index
      %c0_99 = arith.constant 0 : index
      %324 = vector.load %arg3[%c0_98, %c0_99] : memref<8x128xf32, #tpu.memory_space<vmem>>, vector<8x128xf32>
      %c0_100 = arith.constant 0 : index
      %c0_101 = arith.constant 0 : index
      %325 = vector.load %arg11[%c0_100, %c0_101] : memref<8x128xf32, #tpu.memory_space<vmem>>, vector<8x128xf32>
      tpu.vector_store %arg11[%c0_100, %c0_101], %324 {strides = array<i32>} : memref<8x128xf32, #tpu.memory_space<vmem>>, vector<8x128xf32>,
      %c0_102 = arith.constant 0 : index
      %c0_103 = arith.constant 0 : index
      %326 = vector.load %arg4[%c0_102, %c0_103] : memref<8x128xf32, #tpu.memory_space<vmem>>, vector<8x128xf32>
      %c0_104 = arith.constant 0 : index
      %c0_105 = arith.constant 0 : index
      %327 = vector.load %arg12[%c0_104, %c0_105] : memref<8x128xf32, #tpu.memory_space<vmem>>, vector<8x128xf32>
      tpu.vector_store %arg12[%c0_104, %c0_105], %326 {strides = array<i32>} : memref<8x128xf32, #tpu.memory_space<vmem>>, vector<8x128xf32>,
    } else {
    }
    %c0 = arith.constant 0 : index
    %c0_1 = arith.constant 0 : index
    %c0_2 = arith.constant 0 : index
    %3 = vector.load %arg2[%c0, %c0_1, %c0_2] : memref<8x8x16xbf16, #tpu.memory_space<vmem>>, vector<8x8x16xbf16>
    %4 = vector.shape_cast %3 : vector<8x8x16xbf16> to vector<64x16xbf16>
    %c0_3 = arith.constant 0 : index
    %c0_4 = arith.constant 0 : index
    %5 = vector.load %arg5[%c0_3, %c0_4] : memref<16x512xbf16, #tpu.memory_space<vmem>>, vector<16x512xbf16>
    %cst = arith.constant dense<0.000000e+00> : vector<64x512xf32>
    %6 = tpu.matmul %4, %5, %cst {dimension_numbers = #tpu.dot_dimension_numbers<[1], [0], [0], [1], [0, 0, 1, 1], [], []>} : vector<64x16xbf16>, vector<16x512xbf16>, vector<64x512xf32> -> vector<64x512xf32>
    %c0_5 = arith.constant 0 : index
    %c0_6 = arith.constant 0 : index
    %7 = vector.load %arg7[%c0_5, %c0_6] : memref<1x512xf32, #tpu.memory_space<vmem>>, vector<1x512xf32>
    %8 = vector.broadcast %7 : vector<1x512xf32> to vector<64x512xf32>
    %9 = arith.addf %6, %8 : vector<64x512xf32>
    %10 = vector.shape_cast %9 : vector<64x512xf32> to vector<8x8x512xf32>
    %c0_7 = arith.constant 0 : index
    %c0_8 = arith.constant 0 : index
    %c0_9 = arith.constant 0 : index
    %11 = vector.load %arg13[%c0_7, %c0_8, %c0_9] : memref<8x8x512xf32, #tpu.memory_space<vmem>>, vector<8x8x512xf32>
    tpu.vector_store %arg13[%c0_7, %c0_8, %c0_9], %10 {strides = array<i32>} : memref<8x8x512xf32, #tpu.memory_space<vmem>>, vector<8x8x512xf32>,
    %c0_10 = arith.constant 0 : index
    %c0_11 = arith.constant 0 : index
    %12 = vector.load %arg6[%c0_10, %c0_11] : memref<128x512xbf16, #tpu.memory_space<vmem>>, vector<128x512xbf16>
    %c0_12 = arith.constant 0 : index
    %c0_13 = arith.constant 0 : index
    %13 = vector.load %arg11[%c0_12, %c0_13] : memref<8x128xf32, #tpu.memory_space<vmem>>, vector<8x128xf32>
    %c0_14 = arith.constant 0 : index
    %c0_15 = arith.constant 0 : index
    %14 = vector.load %arg12[%c0_14, %c0_15] : memref<8x128xf32, #tpu.memory_space<vmem>>, vector<8x128xf32>
    %c0_i32_16 = arith.constant 0 : i32
    %15 = arith.index_cast %c0_i32_16 : i32 to index
    %c0_17 = arith.constant 0 : index
    %c0_18 = arith.constant 0 : index
    %16 = vector.load %arg13[%15, %c0_17, %c0_18] : memref<8x8x512xf32, #tpu.memory_space<vmem>>, vector<1x8x512xf32>
    %17 = vector.shape_cast %16 : vector<1x8x512xf32> to vector<8x512xf32>
    %18 = arith.truncf %13 : vector<8x128xf32> to vector<8x128xbf16>
    %cst_19 = arith.constant dense<0.000000e+00> : vector<8x512xf32>
    %19 = tpu.matmul %18, %12, %cst_19 {dimension_numbers = #tpu.dot_dimension_numbers<[1], [0], [0], [1], [0, 0, 1, 1], [], []>} : vector<8x128xbf16>, vector<128x512xbf16>, vector<8x512xf32> -> vector<8x512xf32>
    %20 = arith.addf %17, %19 : vector<8x512xf32>
    %21 = vector.extract_strided_slice %20 {offsets = [0, 0], sizes = [8, 128], strides = [1, 1]} : vector<8x512xf32> to vector<8x128xf32>
    %22 = arith.negf %21 : vector<8x128xf32>
    %23 = math.exp %22 : vector<8x128xf32>
    %cst_20 = arith.constant 1.000000e+00 : f32
    %24 = vector.broadcast %cst_20 : f32 to vector<8x128xf32>
    %25 = arith.addf %24, %23 : vector<8x128xf32>
    %26 = arith.divf %24, %25 : vector<8x128xf32>
    %27 = vector.extract_strided_slice %20 {offsets = [0, 128], sizes = [8, 128], strides = [1, 1]} : vector<8x512xf32> to vector<8x128xf32>
    %28 = arith.negf %27 : vector<8x128xf32>
    %29 = math.exp %28 : vector<8x128xf32>
    %cst_21 = arith.constant 1.000000e+00 : f32
    %30 = vector.broadcast %cst_21 : f32 to vector<8x128xf32>
    %31 = arith.addf %30, %29 : vector<8x128xf32>
    %32 = arith.divf %30, %31 : vector<8x128xf32>
    %33 = vector.extract_strided_slice %20 {offsets = [0, 256], sizes = [8, 128], strides = [1, 1]} : vector<8x512xf32> to vector<8x128xf32>
    %34 = math.tanh %33 : vector<8x128xf32>
    %35 = vector.extract_strided_slice %20 {offsets = [0, 384], sizes = [8, 128], strides = [1, 1]} : vector<8x512xf32> to vector<8x128xf32>
    %36 = arith.negf %35 : vector<8x128xf32>
    %37 = math.exp %36 : vector<8x128xf32>
    %cst_22 = arith.constant 1.000000e+00 : f32
    %38 = vector.broadcast %cst_22 : f32 to vector<8x128xf32>
    %39 = arith.addf %38, %37 : vector<8x128xf32>
    %40 = arith.divf %38, %39 : vector<8x128xf32>
    %41 = arith.mulf %32, %14 : vector<8x128xf32>
    %42 = arith.mulf %26, %34 : vector<8x128xf32>
    %43 = arith.addf %41, %42 : vector<8x128xf32>
    %44 = math.tanh %43 : vector<8x128xf32>
    %45 = arith.mulf %40, %44 : vector<8x128xf32>
    %46 = arith.truncf %45 : vector<8x128xf32> to vector<8x128xbf16>
    %47 = arith.index_cast %c0_i32_16 : i32 to index
    %c0_23 = arith.constant 0 : index
    %c0_24 = arith.constant 0 : index
    %48 = vector.load %arg14[%47, %c0_23, %c0_24] : memref<8x8x128xbf16, #tpu.memory_space<vmem>>, vector<1x8x128xbf16>
    %49 = vector.shape_cast %48 : vector<1x8x128xbf16> to vector<8x128xbf16>
    %50 = vector.shape_cast %46 : vector<8x128xbf16> to vector<1x8x128xbf16>
    tpu.vector_store %arg14[%47, %c0_23, %c0_24], %50 {strides = array<i32>} : memref<8x8x128xbf16, #tpu.memory_space<vmem>>, vector<1x8x128xbf16>,
    %c1_i32 = arith.constant 1 : i32
    %51 = arith.index_cast %c1_i32 : i32 to index
    %c0_25 = arith.constant 0 : index
    %c0_26 = arith.constant 0 : index
    %52 = vector.load %arg13[%51, %c0_25, %c0_26] : memref<8x8x512xf32, #tpu.memory_space<vmem>>, vector<1x8x512xf32>
    %53 = vector.shape_cast %52 : vector<1x8x512xf32> to vector<8x512xf32>
    %54 = arith.truncf %45 : vector<8x128xf32> to vector<8x128xbf16>
    %cst_27 = arith.constant dense<0.000000e+00> : vector<8x512xf32>
    %55 = tpu.matmul %54, %12, %cst_27 {dimension_numbers = #tpu.dot_dimension_numbers<[1], [0], [0], [1], [0, 0, 1, 1], [], []>} : vector<8x128xbf16>, vector<128x512xbf16>, vector<8x512xf32> -> vector<8x512xf32>
    %56 = arith.addf %53, %55 : vector<8x512xf32>
    %57 = vector.extract_strided_slice %56 {offsets = [0, 0], sizes = [8, 128], strides = [1, 1]} : vector<8x512xf32> to vector<8x128xf32>
    %58 = arith.negf %57 : vector<8x128xf32>
    %59 = math.exp %58 : vector<8x128xf32>
    %cst_28 = arith.constant 1.000000e+00 : f32
    %60 = vector.broadcast %cst_28 : f32 to vector<8x128xf32>
    %61 = arith.addf %60, %59 : vector<8x128xf32>
    %62 = arith.divf %60, %61 : vector<8x128xf32>
    %63 = vector.extract_strided_slice %56 {offsets = [0, 128], sizes = [8, 128], strides = [1, 1]} : vector<8x512xf32> to vector<8x128xf32>
    %64 = arith.negf %63 : vector<8x128xf32>
    %65 = math.exp %64 : vector<8x128xf32>
    %cst_29 = arith.constant 1.000000e+00 : f32
    %66 = vector.broadcast %cst_29 : f32 to vector<8x128xf32>
    %67 = arith.addf %66, %65 : vector<8x128xf32>
    %68 = arith.divf %66, %67 : vector<8x128xf32>
    %69 = vector.extract_strided_slice %56 {offsets = [0, 256], sizes = [8, 128], strides = [1, 1]} : vector<8x512xf32> to vector<8x128xf32>
    %70 = math.tanh %69 : vector<8x128xf32>
    %71 = vector.extract_strided_slice %56 {offsets = [0, 384], sizes = [8, 128], strides = [1, 1]} : vector<8x512xf32> to vector<8x128xf32>
    %72 = arith.negf %71 : vector<8x128xf32>
    %73 = math.exp %72 : vector<8x128xf32>
    %cst_30 = arith.constant 1.000000e+00 : f32
    %74 = vector.broadcast %cst_30 : f32 to vector<8x128xf32>
    %75 = arith.addf %74, %73 : vector<8x128xf32>
    %76 = arith.divf %74, %75 : vector<8x128xf32>
    %77 = arith.mulf %68, %43 : vector<8x128xf32>
    %78 = arith.mulf %62, %70 : vector<8x128xf32>
    %79 = arith.addf %77, %78 : vector<8x128xf32>
    %80 = math.tanh %79 : vector<8x128xf32>
    %81 = arith.mulf %76, %80 : vector<8x128xf32>
    %82 = arith.truncf %81 : vector<8x128xf32> to vector<8x128xbf16>
    %83 = arith.index_cast %c1_i32 : i32 to index
    %c0_31 = arith.constant 0 : index
    %c0_32 = arith.constant 0 : index
    %84 = vector.load %arg14[%83, %c0_31, %c0_32] : memref<8x8x128xbf16, #tpu.memory_space<vmem>>, vector<1x8x128xbf16>
    %85 = vector.shape_cast %84 : vector<1x8x128xbf16> to vector<8x128xbf16>
    %86 = vector.shape_cast %82 : vector<8x128xbf16> to vector<1x8x128xbf16>
    tpu.vector_store %arg14[%83, %c0_31, %c0_32], %86 {strides = array<i32>} : memref<8x8x128xbf16, #tpu.memory_space<vmem>>, vector<1x8x128xbf16>,
    %c2_i32 = arith.constant 2 : i32
    %87 = arith.index_cast %c2_i32 : i32 to index
    %c0_33 = arith.constant 0 : index
    %c0_34 = arith.constant 0 : index
    %88 = vector.load %arg13[%87, %c0_33, %c0_34] : memref<8x8x512xf32, #tpu.memory_space<vmem>>, vector<1x8x512xf32>
    %89 = vector.shape_cast %88 : vector<1x8x512xf32> to vector<8x512xf32>
    %90 = arith.truncf %81 : vector<8x128xf32> to vector<8x128xbf16>
    %cst_35 = arith.constant dense<0.000000e+00> : vector<8x512xf32>
    %91 = tpu.matmul %90, %12, %cst_35 {dimension_numbers = #tpu.dot_dimension_numbers<[1], [0], [0], [1], [0, 0, 1, 1], [], []>} : vector<8x128xbf16>, vector<128x512xbf16>, vector<8x512xf32> -> vector<8x512xf32>
    %92 = arith.addf %89, %91 : vector<8x512xf32>
    %93 = vector.extract_strided_slice %92 {offsets = [0, 0], sizes = [8, 128], strides = [1, 1]} : vector<8x512xf32> to vector<8x128xf32>
    %94 = arith.negf %93 : vector<8x128xf32>
    %95 = math.exp %94 : vector<8x128xf32>
    %cst_36 = arith.constant 1.000000e+00 : f32
    %96 = vector.broadcast %cst_36 : f32 to vector<8x128xf32>
    %97 = arith.addf %96, %95 : vector<8x128xf32>
    %98 = arith.divf %96, %97 : vector<8x128xf32>
    %99 = vector.extract_strided_slice %92 {offsets = [0, 128], sizes = [8, 128], strides = [1, 1]} : vector<8x512xf32> to vector<8x128xf32>
    %100 = arith.negf %99 : vector<8x128xf32>
    %101 = math.exp %100 : vector<8x128xf32>
    %cst_37 = arith.constant 1.000000e+00 : f32
    %102 = vector.broadcast %cst_37 : f32 to vector<8x128xf32>
    %103 = arith.addf %102, %101 : vector<8x128xf32>
    %104 = arith.divf %102, %103 : vector<8x128xf32>
    %105 = vector.extract_strided_slice %92 {offsets = [0, 256], sizes = [8, 128], strides = [1, 1]} : vector<8x512xf32> to vector<8x128xf32>
    %106 = math.tanh %105 : vector<8x128xf32>
    %107 = vector.extract_strided_slice %92 {offsets = [0, 384], sizes = [8, 128], strides = [1, 1]} : vector<8x512xf32> to vector<8x128xf32>
    %108 = arith.negf %107 : vector<8x128xf32>
    %109 = math.exp %108 : vector<8x128xf32>
    %cst_38 = arith.constant 1.000000e+00 : f32
    %110 = vector.broadcast %cst_38 : f32 to vector<8x128xf32>
    %111 = arith.addf %110, %109 : vector<8x128xf32>
    %112 = arith.divf %110, %111 : vector<8x128xf32>
    %113 = arith.mulf %104, %79 : vector<8x128xf32>
    %114 = arith.mulf %98, %106 : vector<8x128xf32>
    %115 = arith.addf %113, %114 : vector<8x128xf32>
    %116 = math.tanh %115 : vector<8x128xf32>
    %117 = arith.mulf %112, %116 : vector<8x128xf32>
    %118 = arith.truncf %117 : vector<8x128xf32> to vector<8x128xbf16>
    %119 = arith.index_cast %c2_i32 : i32 to index
    %c0_39 = arith.constant 0 : index
    %c0_40 = arith.constant 0 : index
    %120 = vector.load %arg14[%119, %c0_39, %c0_40] : memref<8x8x128xbf16, #tpu.memory_space<vmem>>, vector<1x8x128xbf16>
    %121 = vector.shape_cast %120 : vector<1x8x128xbf16> to vector<8x128xbf16>
    %122 = vector.shape_cast %118 : vector<8x128xbf16> to vector<1x8x128xbf16>
    tpu.vector_store %arg14[%119, %c0_39, %c0_40], %122 {strides = array<i32>} : memref<8x8x128xbf16, #tpu.memory_space<vmem>>, vector<1x8x128xbf16>,
    %c3_i32 = arith.constant 3 : i32
    %123 = arith.index_cast %c3_i32 : i32 to index
    %c0_41 = arith.constant 0 : index
    %c0_42 = arith.constant 0 : index
    %124 = vector.load %arg13[%123, %c0_41, %c0_42] : memref<8x8x512xf32, #tpu.memory_space<vmem>>, vector<1x8x512xf32>
    %125 = vector.shape_cast %124 : vector<1x8x512xf32> to vector<8x512xf32>
    %126 = arith.truncf %117 : vector<8x128xf32> to vector<8x128xbf16>
    %cst_43 = arith.constant dense<0.000000e+00> : vector<8x512xf32>
    %127 = tpu.matmul %126, %12, %cst_43 {dimension_numbers = #tpu.dot_dimension_numbers<[1], [0], [0], [1], [0, 0, 1, 1], [], []>} : vector<8x128xbf16>, vector<128x512xbf16>, vector<8x512xf32> -> vector<8x512xf32>
    %128 = arith.addf %125, %127 : vector<8x512xf32>
    %129 = vector.extract_strided_slice %128 {offsets = [0, 0], sizes = [8, 128], strides = [1, 1]} : vector<8x512xf32> to vector<8x128xf32>
    %130 = arith.negf %129 : vector<8x128xf32>
    %131 = math.exp %130 : vector<8x128xf32>
    %cst_44 = arith.constant 1.000000e+00 : f32
    %132 = vector.broadcast %cst_44 : f32 to vector<8x128xf32>
    %133 = arith.addf %132, %131 : vector<8x128xf32>
    %134 = arith.divf %132, %133 : vector<8x128xf32>
    %135 = vector.extract_strided_slice %128 {offsets = [0, 128], sizes = [8, 128], strides = [1, 1]} : vector<8x512xf32> to vector<8x128xf32>
    %136 = arith.negf %135 : vector<8x128xf32>
    %137 = math.exp %136 : vector<8x128xf32>
    %cst_45 = arith.constant 1.000000e+00 : f32
    %138 = vector.broadcast %cst_45 : f32 to vector<8x128xf32>
    %139 = arith.addf %138, %137 : vector<8x128xf32>
    %140 = arith.divf %138, %139 : vector<8x128xf32>
    %141 = vector.extract_strided_slice %128 {offsets = [0, 256], sizes = [8, 128], strides = [1, 1]} : vector<8x512xf32> to vector<8x128xf32>
    %142 = math.tanh %141 : vector<8x128xf32>
    %143 = vector.extract_strided_slice %128 {offsets = [0, 384], sizes = [8, 128], strides = [1, 1]} : vector<8x512xf32> to vector<8x128xf32>
    %144 = arith.negf %143 : vector<8x128xf32>
    %145 = math.exp %144 : vector<8x128xf32>
    %cst_46 = arith.constant 1.000000e+00 : f32
    %146 = vector.broadcast %cst_46 : f32 to vector<8x128xf32>
    %147 = arith.addf %146, %145 : vector<8x128xf32>
    %148 = arith.divf %146, %147 : vector<8x128xf32>
    %149 = arith.mulf %140, %115 : vector<8x128xf32>
    %150 = arith.mulf %134, %142 : vector<8x128xf32>
    %151 = arith.addf %149, %150 : vector<8x128xf32>
    %152 = math.tanh %151 : vector<8x128xf32>
    %153 = arith.mulf %148, %152 : vector<8x128xf32>
    %154 = arith.truncf %153 : vector<8x128xf32> to vector<8x128xbf16>
    %155 = arith.index_cast %c3_i32 : i32 to index
    %c0_47 = arith.constant 0 : index
    %c0_48 = arith.constant 0 : index
    %156 = vector.load %arg14[%155, %c0_47, %c0_48] : memref<8x8x128xbf16, #tpu.memory_space<vmem>>, vector<1x8x128xbf16>
    %157 = vector.shape_cast %156 : vector<1x8x128xbf16> to vector<8x128xbf16>
    %158 = vector.shape_cast %154 : vector<8x128xbf16> to vector<1x8x128xbf16>
    tpu.vector_store %arg14[%155, %c0_47, %c0_48], %158 {strides = array<i32>} : memref<8x8x128xbf16, #tpu.memory_space<vmem>>, vector<1x8x128xbf16>,
    %c4_i32 = arith.constant 4 : i32
    %159 = arith.index_cast %c4_i32 : i32 to index
    %c0_49 = arith.constant 0 : index
    %c0_50 = arith.constant 0 : index
    %160 = vector.load %arg13[%159, %c0_49, %c0_50] : memref<8x8x512xf32, #tpu.memory_space<vmem>>, vector<1x8x512xf32>
    %161 = vector.shape_cast %160 : vector<1x8x512xf32> to vector<8x512xf32>
    %162 = arith.truncf %153 : vector<8x128xf32> to vector<8x128xbf16>
    %cst_51 = arith.constant dense<0.000000e+00> : vector<8x512xf32>
    %163 = tpu.matmul %162, %12, %cst_51 {dimension_numbers = #tpu.dot_dimension_numbers<[1], [0], [0], [1], [0, 0, 1, 1], [], []>} : vector<8x128xbf16>, vector<128x512xbf16>, vector<8x512xf32> -> vector<8x512xf32>
    %164 = arith.addf %161, %163 : vector<8x512xf32>
    %165 = vector.extract_strided_slice %164 {offsets = [0, 0], sizes = [8, 128], strides = [1, 1]} : vector<8x512xf32> to vector<8x128xf32>
    %166 = arith.negf %165 : vector<8x128xf32>
    %167 = math.exp %166 : vector<8x128xf32>
    %cst_52 = arith.constant 1.000000e+00 : f32
    %168 = vector.broadcast %cst_52 : f32 to vector<8x128xf32>
    %169 = arith.addf %168, %167 : vector<8x128xf32>
    %170 = arith.divf %168, %169 : vector<8x128xf32>
    %171 = vector.extract_strided_slice %164 {offsets = [0, 128], sizes = [8, 128], strides = [1, 1]} : vector<8x512xf32> to vector<8x128xf32>
    %172 = arith.negf %171 : vector<8x128xf32>
    %173 = math.exp %172 : vector<8x128xf32>
    %cst_53 = arith.constant 1.000000e+00 : f32
    %174 = vector.broadcast %cst_53 : f32 to vector<8x128xf32>
    %175 = arith.addf %174, %173 : vector<8x128xf32>
    %176 = arith.divf %174, %175 : vector<8x128xf32>
    %177 = vector.extract_strided_slice %164 {offsets = [0, 256], sizes = [8, 128], strides = [1, 1]} : vector<8x512xf32> to vector<8x128xf32>
    %178 = math.tanh %177 : vector<8x128xf32>
    %179 = vector.extract_strided_slice %164 {offsets = [0, 384], sizes = [8, 128], strides = [1, 1]} : vector<8x512xf32> to vector<8x128xf32>
    %180 = arith.negf %179 : vector<8x128xf32>
    %181 = math.exp %180 : vector<8x128xf32>
    %cst_54 = arith.constant 1.000000e+00 : f32
    %182 = vector.broadcast %cst_54 : f32 to vector<8x128xf32>
    %183 = arith.addf %182, %181 : vector<8x128xf32>
    %184 = arith.divf %182, %183 : vector<8x128xf32>
    %185 = arith.mulf %176, %151 : vector<8x128xf32>
    %186 = arith.mulf %170, %178 : vector<8x128xf32>
    %187 = arith.addf %185, %186 : vector<8x128xf32>
    %188 = math.tanh %187 : vector<8x128xf32>
    %189 = arith.mulf %184, %188 : vector<8x128xf32>
    %190 = arith.truncf %189 : vector<8x128xf32> to vector<8x128xbf16>
    %191 = arith.index_cast %c4_i32 : i32 to index
    %c0_55 = arith.constant 0 : index
    %c0_56 = arith.constant 0 : index
    %192 = vector.load %arg14[%191, %c0_55, %c0_56] : memref<8x8x128xbf16, #tpu.memory_space<vmem>>, vector<1x8x128xbf16>
    %193 = vector.shape_cast %192 : vector<1x8x128xbf16> to vector<8x128xbf16>
    %194 = vector.shape_cast %190 : vector<8x128xbf16> to vector<1x8x128xbf16>
    tpu.vector_store %arg14[%191, %c0_55, %c0_56], %194 {strides = array<i32>} : memref<8x8x128xbf16, #tpu.memory_space<vmem>>, vector<1x8x128xbf16>,
    %c5_i32 = arith.constant 5 : i32
    %195 = arith.index_cast %c5_i32 : i32 to index
    %c0_57 = arith.constant 0 : index
    %c0_58 = arith.constant 0 : index
    %196 = vector.load %arg13[%195, %c0_57, %c0_58] : memref<8x8x512xf32, #tpu.memory_space<vmem>>, vector<1x8x512xf32>
    %197 = vector.shape_cast %196 : vector<1x8x512xf32> to vector<8x512xf32>
    %198 = arith.truncf %189 : vector<8x128xf32> to vector<8x128xbf16>
    %cst_59 = arith.constant dense<0.000000e+00> : vector<8x512xf32>
    %199 = tpu.matmul %198, %12, %cst_59 {dimension_numbers = #tpu.dot_dimension_numbers<[1], [0], [0], [1], [0, 0, 1, 1], [], []>} : vector<8x128xbf16>, vector<128x512xbf16>, vector<8x512xf32> -> vector<8x512xf32>
    %200 = arith.addf %197, %199 : vector<8x512xf32>
    %201 = vector.extract_strided_slice %200 {offsets = [0, 0], sizes = [8, 128], strides = [1, 1]} : vector<8x512xf32> to vector<8x128xf32>
    %202 = arith.negf %201 : vector<8x128xf32>
    %203 = math.exp %202 : vector<8x128xf32>
    %cst_60 = arith.constant 1.000000e+00 : f32
    %204 = vector.broadcast %cst_60 : f32 to vector<8x128xf32>
    %205 = arith.addf %204, %203 : vector<8x128xf32>
    %206 = arith.divf %204, %205 : vector<8x128xf32>
    %207 = vector.extract_strided_slice %200 {offsets = [0, 128], sizes = [8, 128], strides = [1, 1]} : vector<8x512xf32> to vector<8x128xf32>
    %208 = arith.negf %207 : vector<8x128xf32>
    %209 = math.exp %208 : vector<8x128xf32>
    %cst_61 = arith.constant 1.000000e+00 : f32
    %210 = vector.broadcast %cst_61 : f32 to vector<8x128xf32>
    %211 = arith.addf %210, %209 : vector<8x128xf32>
    %212 = arith.divf %210, %211 : vector<8x128xf32>
    %213 = vector.extract_strided_slice %200 {offsets = [0, 256], sizes = [8, 128], strides = [1, 1]} : vector<8x512xf32> to vector<8x128xf32>
    %214 = math.tanh %213 : vector<8x128xf32>
    %215 = vector.extract_strided_slice %200 {offsets = [0, 384], sizes = [8, 128], strides = [1, 1]} : vector<8x512xf32> to vector<8x128xf32>
    %216 = arith.negf %215 : vector<8x128xf32>
    %217 = math.exp %216 : vector<8x128xf32>
    %cst_62 = arith.constant 1.000000e+00 : f32
    %218 = vector.broadcast %cst_62 : f32 to vector<8x128xf32>
    %219 = arith.addf %218, %217 : vector<8x128xf32>
    %220 = arith.divf %218, %219 : vector<8x128xf32>
    %221 = arith.mulf %212, %187 : vector<8x128xf32>
    %222 = arith.mulf %206, %214 : vector<8x128xf32>
    %223 = arith.addf %221, %222 : vector<8x128xf32>
    %224 = math.tanh %223 : vector<8x128xf32>
    %225 = arith.mulf %220, %224 : vector<8x128xf32>
    %226 = arith.truncf %225 : vector<8x128xf32> to vector<8x128xbf16>
    %227 = arith.index_cast %c5_i32 : i32 to index
    %c0_63 = arith.constant 0 : index
    %c0_64 = arith.constant 0 : index
    %228 = vector.load %arg14[%227, %c0_63, %c0_64] : memref<8x8x128xbf16, #tpu.memory_space<vmem>>, vector<1x8x128xbf16>
    %229 = vector.shape_cast %228 : vector<1x8x128xbf16> to vector<8x128xbf16>
    %230 = vector.shape_cast %226 : vector<8x128xbf16> to vector<1x8x128xbf16>
    tpu.vector_store %arg14[%227, %c0_63, %c0_64], %230 {strides = array<i32>} : memref<8x8x128xbf16, #tpu.memory_space<vmem>>, vector<1x8x128xbf16>,
    %c6_i32 = arith.constant 6 : i32
    %231 = arith.index_cast %c6_i32 : i32 to index
    %c0_65 = arith.constant 0 : index
    %c0_66 = arith.constant 0 : index
    %232 = vector.load %arg13[%231, %c0_65, %c0_66] : memref<8x8x512xf32, #tpu.memory_space<vmem>>, vector<1x8x512xf32>
    %233 = vector.shape_cast %232 : vector<1x8x512xf32> to vector<8x512xf32>
    %234 = arith.truncf %225 : vector<8x128xf32> to vector<8x128xbf16>
    %cst_67 = arith.constant dense<0.000000e+00> : vector<8x512xf32>
    %235 = tpu.matmul %234, %12, %cst_67 {dimension_numbers = #tpu.dot_dimension_numbers<[1], [0], [0], [1], [0, 0, 1, 1], [], []>} : vector<8x128xbf16>, vector<128x512xbf16>, vector<8x512xf32> -> vector<8x512xf32>
    %236 = arith.addf %233, %235 : vector<8x512xf32>
    %237 = vector.extract_strided_slice %236 {offsets = [0, 0], sizes = [8, 128], strides = [1, 1]} : vector<8x512xf32> to vector<8x128xf32>
    %238 = arith.negf %237 : vector<8x128xf32>
    %239 = math.exp %238 : vector<8x128xf32>
    %cst_68 = arith.constant 1.000000e+00 : f32
    %240 = vector.broadcast %cst_68 : f32 to vector<8x128xf32>
    %241 = arith.addf %240, %239 : vector<8x128xf32>
    %242 = arith.divf %240, %241 : vector<8x128xf32>
    %243 = vector.extract_strided_slice %236 {offsets = [0, 128], sizes = [8, 128], strides = [1, 1]} : vector<8x512xf32> to vector<8x128xf32>
    %244 = arith.negf %243 : vector<8x128xf32>
    %245 = math.exp %244 : vector<8x128xf32>
    %cst_69 = arith.constant 1.000000e+00 : f32
    %246 = vector.broadcast %cst_69 : f32 to vector<8x128xf32>
    %247 = arith.addf %246, %245 : vector<8x128xf32>
    %248 = arith.divf %246, %247 : vector<8x128xf32>
    %249 = vector.extract_strided_slice %236 {offsets = [0, 256], sizes = [8, 128], strides = [1, 1]} : vector<8x512xf32> to vector<8x128xf32>
    %250 = math.tanh %249 : vector<8x128xf32>
    %251 = vector.extract_strided_slice %236 {offsets = [0, 384], sizes = [8, 128], strides = [1, 1]} : vector<8x512xf32> to vector<8x128xf32>
    %252 = arith.negf %251 : vector<8x128xf32>
    %253 = math.exp %252 : vector<8x128xf32>
    %cst_70 = arith.constant 1.000000e+00 : f32
    %254 = vector.broadcast %cst_70 : f32 to vector<8x128xf32>
    %255 = arith.addf %254, %253 : vector<8x128xf32>
    %256 = arith.divf %254, %255 : vector<8x128xf32>
    %257 = arith.mulf %248, %223 : vector<8x128xf32>
    %258 = arith.mulf %242, %250 : vector<8x128xf32>
    %259 = arith.addf %257, %258 : vector<8x128xf32>
    %260 = math.tanh %259 : vector<8x128xf32>
    %261 = arith.mulf %256, %260 : vector<8x128xf32>
    %262 = arith.truncf %261 : vector<8x128xf32> to vector<8x128xbf16>
    %263 = arith.index_cast %c6_i32 : i32 to index
    %c0_71 = arith.constant 0 : index
    %c0_72 = arith.constant 0 : index
    %264 = vector.load %arg14[%263, %c0_71, %c0_72] : memref<8x8x128xbf16, #tpu.memory_space<vmem>>, vector<1x8x128xbf16>
    %265 = vector.shape_cast %264 : vector<1x8x128xbf16> to vector<8x128xbf16>
    %266 = vector.shape_cast %262 : vector<8x128xbf16> to vector<1x8x128xbf16>
    tpu.vector_store %arg14[%263, %c0_71, %c0_72], %266 {strides = array<i32>} : memref<8x8x128xbf16, #tpu.memory_space<vmem>>, vector<1x8x128xbf16>,
    %c7_i32 = arith.constant 7 : i32
    %267 = arith.index_cast %c7_i32 : i32 to index
    %c0_73 = arith.constant 0 : index
    %c0_74 = arith.constant 0 : index
    %268 = vector.load %arg13[%267, %c0_73, %c0_74] : memref<8x8x512xf32, #tpu.memory_space<vmem>>, vector<1x8x512xf32>
    %269 = vector.shape_cast %268 : vector<1x8x512xf32> to vector<8x512xf32>
    %270 = arith.truncf %261 : vector<8x128xf32> to vector<8x128xbf16>
    %cst_75 = arith.constant dense<0.000000e+00> : vector<8x512xf32>
    %271 = tpu.matmul %270, %12, %cst_75 {dimension_numbers = #tpu.dot_dimension_numbers<[1], [0], [0], [1], [0, 0, 1, 1], [], []>} : vector<8x128xbf16>, vector<128x512xbf16>, vector<8x512xf32> -> vector<8x512xf32>
    %272 = arith.addf %269, %271 : vector<8x512xf32>
    %273 = vector.extract_strided_slice %272 {offsets = [0, 0], sizes = [8, 128], strides = [1, 1]} : vector<8x512xf32> to vector<8x128xf32>
    %274 = arith.negf %273 : vector<8x128xf32>
    %275 = math.exp %274 : vector<8x128xf32>
    %cst_76 = arith.constant 1.000000e+00 : f32
    %276 = vector.broadcast %cst_76 : f32 to vector<8x128xf32>
    %277 = arith.addf %276, %275 : vector<8x128xf32>
    %278 = arith.divf %276, %277 : vector<8x128xf32>
    %279 = vector.extract_strided_slice %272 {offsets = [0, 128], sizes = [8, 128], strides = [1, 1]} : vector<8x512xf32> to vector<8x128xf32>
    %280 = arith.negf %279 : vector<8x128xf32>
    %281 = math.exp %280 : vector<8x128xf32>
    %cst_77 = arith.constant 1.000000e+00 : f32
    %282 = vector.broadcast %cst_77 : f32 to vector<8x128xf32>
    %283 = arith.addf %282, %281 : vector<8x128xf32>
    %284 = arith.divf %282, %283 : vector<8x128xf32>
    %285 = vector.extract_strided_slice %272 {offsets = [0, 256], sizes = [8, 128], strides = [1, 1]} : vector<8x512xf32> to vector<8x128xf32>
    %286 = math.tanh %285 : vector<8x128xf32>
    %287 = vector.extract_strided_slice %272 {offsets = [0, 384], sizes = [8, 128], strides = [1, 1]} : vector<8x512xf32> to vector<8x128xf32>
    %288 = arith.negf %287 : vector<8x128xf32>
    %289 = math.exp %288 : vector<8x128xf32>
    %cst_78 = arith.constant 1.000000e+00 : f32
    %290 = vector.broadcast %cst_78 : f32 to vector<8x128xf32>
    %291 = arith.addf %290, %289 : vector<8x128xf32>
    %292 = arith.divf %290, %291 : vector<8x128xf32>
    %293 = arith.mulf %284, %259 : vector<8x128xf32>
    %294 = arith.mulf %278, %286 : vector<8x128xf32>
    %295 = arith.addf %293, %294 : vector<8x128xf32>
    %296 = math.tanh %295 : vector<8x128xf32>
    %297 = arith.mulf %292, %296 : vector<8x128xf32>
    %298 = arith.truncf %297 : vector<8x128xf32> to vector<8x128xbf16>
    %299 = arith.index_cast %c7_i32 : i32 to index
    %c0_79 = arith.constant 0 : index
    %c0_80 = arith.constant 0 : index
    %300 = vector.load %arg14[%299, %c0_79, %c0_80] : memref<8x8x128xbf16, #tpu.memory_space<vmem>>, vector<1x8x128xbf16>
    %301 = vector.shape_cast %300 : vector<1x8x128xbf16> to vector<8x128xbf16>
    %302 = vector.shape_cast %298 : vector<8x128xbf16> to vector<1x8x128xbf16>
    tpu.vector_store %arg14[%299, %c0_79, %c0_80], %302 {strides = array<i32>} : memref<8x8x128xbf16, #tpu.memory_space<vmem>>, vector<1x8x128xbf16>,
    %c8_i32 = arith.constant 8 : i32
    %c0_81 = arith.constant 0 : index
    %c0_82 = arith.constant 0 : index
    %303 = vector.load %arg11[%c0_81, %c0_82] : memref<8x128xf32, #tpu.memory_space<vmem>>, vector<8x128xf32>
    tpu.vector_store %arg11[%c0_81, %c0_82], %297 {strides = array<i32>} : memref<8x128xf32, #tpu.memory_space<vmem>>, vector<8x128xf32>,
    %c0_83 = arith.constant 0 : index
    %c0_84 = arith.constant 0 : index
    %304 = vector.load %arg12[%c0_83, %c0_84] : memref<8x128xf32, #tpu.memory_space<vmem>>, vector<8x128xf32>
    tpu.vector_store %arg12[%c0_83, %c0_84], %295 {strides = array<i32>} : memref<8x128xf32, #tpu.memory_space<vmem>>, vector<8x128xf32>,
    %c0_85 = arith.constant 0 : index
    %c0_86 = arith.constant 0 : index
    %c0_87 = arith.constant 0 : index
    %305 = vector.load %arg14[%c0_85, %c0_86, %c0_87] : memref<8x8x128xbf16, #tpu.memory_space<vmem>>, vector<8x8x128xbf16>
    %306 = vector.shape_cast %305 : vector<8x8x128xbf16> to vector<64x128xbf16>
    %c0_88 = arith.constant 0 : index
    %c0_89 = arith.constant 0 : index
    %307 = vector.load %arg8[%c0_88, %c0_89] : memref<128x128xbf16, #tpu.memory_space<vmem>>, vector<128x128xbf16>
    %cst_90 = arith.constant dense<0.000000e+00> : vector<64x128xf32>
    %308 = tpu.matmul %306, %307, %cst_90 {dimension_numbers = #tpu.dot_dimension_numbers<[1], [0], [0], [1], [0, 0, 1, 1], [], []>} : vector<64x128xbf16>, vector<128x128xbf16>, vector<64x128xf32> -> vector<64x128xf32>
    %c0_91 = arith.constant 0 : index
    %c0_92 = arith.constant 0 : index
    %309 = vector.load %arg9[%c0_91, %c0_92] : memref<1x128xf32, #tpu.memory_space<vmem>>, vector<1x128xf32>
    %310 = vector.broadcast %309 : vector<1x128xf32> to vector<64x128xf32>
    %311 = arith.addf %308, %310 : vector<64x128xf32>
    %cst_93 = arith.constant dense<0xFF800000> : vector<64xf32>
    %312 = vector.multi_reduction <maximumf>, %311, %cst_93 [1] : vector<64x128xf32> to vector<64xf32>
    %313 = vector.shape_cast %312 : vector<64xf32> to vector<64x1xf32>
    %314 = vector.broadcast %313 : vector<64x1xf32> to vector<64x128xf32>
    %315 = arith.subf %311, %314 : vector<64x128xf32>
    %316 = math.exp %315 : vector<64x128xf32>
    %cst_94 = arith.constant dense<0.000000e+00> : vector<64xf32>
    %317 = vector.multi_reduction <add>, %316, %cst_94 [1] : vector<64x128xf32> to vector<64xf32>
    %318 = vector.shape_cast %317 : vector<64xf32> to vector<64x1xf32>
    %319 = math.log %318 : vector<64x1xf32>
    %320 = vector.broadcast %319 : vector<64x1xf32> to vector<64x128xf32>
    %321 = arith.subf %315, %320 : vector<64x128xf32>
    %322 = vector.shape_cast %321 : vector<64x128xf32> to vector<8x8x128xf32>
    %c0_95 = arith.constant 0 : index
    %c0_96 = arith.constant 0 : index
    %c0_97 = arith.constant 0 : index
    %323 = vector.load %arg10[%c0_95, %c0_96, %c0_97] : memref<8x8x128xf32, #tpu.memory_space<vmem>>, vector<8x8x128xf32>
    tpu.vector_store %arg10[%c0_95, %c0_96, %c0_97], %322 {strides = array<i32>} : memref<8x8x128xf32, #tpu.memory_space<vmem>>, vector<8x8x128xf32>,
    return
  }
  func.func @transform_0(%arg0: i32, %arg1: i32) -> (i32, i32, i32) {
    %c0_i32 = arith.constant 0 : i32
    %c0_i32_0 = arith.constant 0 : i32
    return %arg1, %arg0, %c0_i32 : i32, i32, i32
  }
  func.func @transform_1(%arg0: i32, %arg1: i32) -> (i32, i32) {
    %c0_i32 = arith.constant 0 : i32
    %c0_i32_0 = arith.constant 0 : i32
    return %arg0, %c0_i32 : i32, i32
  }
  func.func @transform_2(%arg0: i32, %arg1: i32) -> (i32, i32) {
    %c0_i32 = arith.constant 0 : i32
    %c0_i32_0 = arith.constant 0 : i32
    return %arg0, %c0_i32 : i32, i32
  }
  func.func @transform_3(%arg0: i32, %arg1: i32) -> (i32, i32) {
    %c0_i32 = arith.constant 0 : i32
    %c0_i32_0 = arith.constant 0 : i32
    %c0_i32_1 = arith.constant 0 : i32
    return %c0_i32, %c0_i32_0 : i32, i32
  }
  func.func @transform_4(%arg0: i32, %arg1: i32) -> (i32, i32) {
    %c0_i32 = arith.constant 0 : i32
    %c0_i32_0 = arith.constant 0 : i32
    %c0_i32_1 = arith.constant 0 : i32
    return %c0_i32, %c0_i32_0 : i32, i32
  }
  func.func @transform_5(%arg0: i32, %arg1: i32) -> (i32, i32) {
    %c0_i32 = arith.constant 0 : i32
    %c0_i32_0 = arith.constant 0 : i32
    %c0_i32_1 = arith.constant 0 : i32
    return %c0_i32, %c0_i32_0 : i32, i32
  }
  func.func @transform_6(%arg0: i32, %arg1: i32) -> (i32, i32) {
    %c0_i32 = arith.constant 0 : i32
    %c0_i32_0 = arith.constant 0 : i32
    %c0_i32_1 = arith.constant 0 : i32
    return %c0_i32, %c0_i32_0 : i32, i32
  }
  func.func @transform_7(%arg0: i32, %arg1: i32) -> (i32, i32) {
    %c0_i32 = arith.constant 0 : i32
    %c0_i32_0 = arith.constant 0 : i32
    %c0_i32_1 = arith.constant 0 : i32
    return %c0_i32, %c0_i32_0 : i32, i32
  }
  func.func @transform_8(%arg0: i32, %arg1: i32) -> (i32, i32, i32) {
    %c0_i32 = arith.constant 0 : i32
    %c0_i32_0 = arith.constant 0 : i32
    return %arg1, %arg0, %c0_i32 : i32, i32, i32
  }
  func.func @transform_9(%arg0: i32, %arg1: i32) -> (i32, i32) {
    %c0_i32 = arith.constant 0 : i32
    %c0_i32_0 = arith.constant 0 : i32
    return %arg0, %c0_i32 : i32, i32
  }
  func.func @transform_10(%arg0: i32, %arg1: i32) -> (i32, i32) {
    %c0_i32 = arith.constant 0 : i32
    %c0_i32_0 = arith.constant 0 : i32
    return %arg0, %c0_i32 : i32, i32
  }
}

</mosaic_0001>

<bundles_post_ra>
// kernel: lstm_forward_seq.1
= control target key start
LH: loop header
LB: loop body
LE: loop exit
PB: predicated region body
PF: predicated region fallthrough
CT: control target
= control target key end

     0   :  { %v2972_v1 = vmov 0   ;;  %vm115_vm0 = vcmask 130048   ;;  %v55_v43 = vlaneseq  ;;  %s2961_s3 = inlined_call_operand.vmem [shape: bf16[16,512], index: 3, kind: input, shape index: {}]   ;;  %s2962_s0 = inlined_call_operand.vmem [shape: bf16[8,8,16], index: 0, kind: input, shape index: {}]   ;;  %s2963_s4 = inlined_call_operand.vmem [shape: bf16[128,512], index: 4, kind: input, shape index: {}]   ;;  %s2964_s1 = inlined_call_operand.vmem [shape: f32[8,128], index: 1, kind: input, shape index: {}]   ;;  %s2965_s5 = inlined_call_operand.vmem [shape: f32[1,512], index: 5, kind: input, shape index: {}]   ;;  %s2966_s2 = inlined_call_operand.vmem [shape: f32[8,128], index: 2, kind: input, shape index: {}]   ;;  %s2967_s6 = inlined_call_operand.vmem [shape: bf16[128,128], index: 6, kind: input, shape index: {}]   ;;  %s2968_s7 = inlined_call_operand.vmem [shape: f32[1,128], index: 7, kind: input, shape index: {}]   ;;  %s2969_s10 = inlined_call_operand.vmem [shape: f32[8,128], index: 10, kind: output, shape index: {2}]   ;;  %s2970_s9 = inlined_call_operand.vmem [shape: f32[8,128], index: 9, kind: output, shape index: {1}]   ;;  %s2971_s8 = inlined_call_operand.vmem [shape: f32[8,8,128], index: 8, kind: output, shape index: {0}]  }
   0x1   :  { %v1835_v0 = vld [vmem:[%s2961_s3 + $0xc] ss:$16 sps:$4 sm:$0xff]   ;;  %233 = vmatprep.mubr.bf16.mxu1 %v2972_v1  ;;  %160 = vmatprep.mubr.bf16.mxu0 %v2972_v1  ;;  %v1837_v2 = vld [vmem:[%s2961_s3 + $0x8] ss:$16 sps:$4 sm:$0xff]   ;;  %v1838_v3 = vld [vmem:[%s2962_s0] sm:$0xff]  }
   0x2   :  { %201 = vmatprep.subr.bf16.mxu1 %v1835_v0  ;;  %v2167_v4 = vld [vmem:[%s2963_s4 + $0x4] ss:$16 sps:$4 sm:$0xff]   ;;  %v2172_v5 = vld [vmem:[%s2963_s4] ss:$16 sps:$4 sm:$0xff]   ;;  %v1845_v9 = vld [vmem:[%s2962_s0 + $0x8] sm:$0xff]   ;;  %v56_v44 = vshrl.u32 %v55_v43, 7 }
   0x3   :  { %202 = vmatpush1.bf16.msra.mxu1 %v1837_v2  ;;  %v2177_v6 = vld [vmem:[%s2963_s4 + $0x24] ss:$16 sps:$4 sm:$0xff]   ;;  %v2185_v7 = vld [vmem:[%s2963_s4 + $0x20] ss:$16 sps:$4 sm:$0xff]   ;;  %v1859_v21 = vld [vmem:[%s2962_s0 + $0x18] sm:$0xff]  }
   0x4   :  { %505 = vmatprep.subr.bf16.mxu1 %v2167_v4  ;;  %v2192_v8 = vld [vmem:[%s2963_s4 + $0x44] ss:$16 sps:$4 sm:$0xff]   ;;  %v2201_v10 = vld [vmem:[%s2963_s4 + $0x40] ss:$16 sps:$4 sm:$0xff]   ;;  %v2297_v26 = vld [vmem:[%s2963_s4 + $0xc] ss:$16 sps:$4 sm:$0xff]  }
   0x5   :  { %v2207_v11 = vld [vmem:[%s2963_s4 + $0x64] ss:$16 sps:$4 sm:$0xff]   ;;  %v2213_v12 = vld [vmem:[%s2963_s4 + $0x60] ss:$16 sps:$4 sm:$0xff]   ;;  %v2306_v28 = vld [vmem:[%s2963_s4 + $0x8] ss:$16 sps:$4 sm:$0xff]  }
   0x6   :  { %1725 = vmatmul.mubr.msk.bf16.vlgmr.msra.gmra.mrb[0].mxu1 %vm115_vm0, %v1838_v3  ;;  %v1863_v13 = vld [vmem:[%s2961_s3 + $0x4] ss:$16 sps:$4 sm:$0xff]   ;;  %v1865_v14 = vld [vmem:[%s2961_s3] ss:$16 sps:$4 sm:$0xff]   ;;  %v2313_v29 = vld [vmem:[%s2963_s4 + $0x2c] ss:$16 sps:$4 sm:$0xff]  }
   0x7   :  { %506 = vmatpush1.bf16.msra.mxu1 %v2172_v5  ;;  %243 = vmatprep.mubr.bf16.mxu1 %v2972_v1  ;;  %v2227_v15 = vld [vmem:[%s2963_s4 + $0x84] ss:$16 sps:$4 sm:$0xff]   ;;  %v2236_v17 = vld [vmem:[%s2963_s4 + $0x80] ss:$16 sps:$4 sm:$0xff]   ;;  %v2321_v30 = vld [vmem:[%s2963_s4 + $0x28] ss:$16 sps:$4 sm:$0xff]  }
   0x8   :  { %507 = vmatprep.subr.bf16.mxu1 %v2177_v6  ;;  %128 = vmatprep.subr.bf16.mxu0 %v1863_v13  ;;  %v1852_v16 = vld [vmem:[%s2962_s0 + $0x10] sm:$0xff]   ;;  %v37_v25 = vld [vmem:[%s2964_s1] sm:$0xff]  ;;  %v2328_v31 = vld [vmem:[%s2963_s4 + $0x4c] ss:$16 sps:$4 sm:$0xff]   ;;  %v65_v45 = vsub.s32 2, %v56_v44  ;;  %v69_v47 = vsub.s32 3, %v56_v44 }
   0x9   :  { %129 = vmatpush1.bf16.msra.mxu0 %v1865_v14  ;;  %v2243_v18 = vld [vmem:[%s2963_s4 + $0xa4] ss:$16 sps:$4 sm:$0xff]   ;;  %v2252_v19 = vld [vmem:[%s2963_s4 + $0xa0] ss:$16 sps:$4 sm:$0xff]   ;;  %v344_v27 = vpack.c.bf16 %v37_v25, %v37_v25  ;;  %v2337_v32 = vld [vmem:[%s2963_s4 + $0x48] ss:$16 sps:$4 sm:$0xff]  }
   0xa   :  { %622 = vmatprep.subr.bf16.mxu0 %v2167_v4  ;;  %v2259_v20 = vld [vmem:[%s2963_s4 + $0xc4] ss:$16 sps:$4 sm:$0xff]   ;;  %v2271_v22 = vld [vmem:[%s2963_s4 + $0xc0] ss:$16 sps:$4 sm:$0xff]   ;;  %v2344_v33 = vld [vmem:[%s2963_s4 + $0x6c] ss:$16 sps:$4 sm:$0xff]  }
   0xb   :  { %508 = vmatpush1.bf16.msra.mxu1 %v2185_v7  ;;  %v2278_v23 = vld [vmem:[%s2963_s4 + $0xe4] ss:$16 sps:$4 sm:$0xff]   ;;  %v2287_v24 = vld [vmem:[%s2963_s4 + $0xe0] ss:$16 sps:$4 sm:$0xff]   ;;  %v2353_v34 = vld [vmem:[%s2963_s4 + $0x68] ss:$16 sps:$4 sm:$0xff]  }
   0xc   :  { %509 = vmatprep.subr.bf16.mxu1 %v2192_v8  ;;  %1721 = vmatmul.mubr.msk.bf16.vlgmr.msra.gmra.mrb[0].mxu0 %vm115_vm0, %v1838_v3  ;;  %v2360_v35 = vld [vmem:[%s2963_s4 + $0x8c] ss:$16 sps:$4 sm:$0xff]   ;;  %v2367_v36 = vld [vmem:[%s2963_s4 + $0x88] ss:$16 sps:$4 sm:$0xff]   ;;  %v53_v46 = vld [vmem:[%s2965_s5] sm:$0xf] }
   0xd   :  { %623 = vmatpush1.bf16.msra.mxu0 %v2172_v5  ;;  %170 = vmatprep.mubr.bf16.mxu0 %v2972_v1  ;;  %v2374_v37 = vld [vmem:[%s2963_s4 + $0xac] ss:$16 sps:$4 sm:$0xff]   ;;  %v2380_v38 = vld [vmem:[%s2963_s4 + $0xa8] ss:$16 sps:$4 sm:$0xff]   ;;  %v2429_v48 = vrot.slane %v53_v46, %v65_v45  ;;  %v2435_v51 = vrot.slane %v53_v46, %v69_v47  ;;  %v57_v0 = vsub.s32 0, %v56_v44  ;;  %v61_v2 = vsub.s32 1, %v56_v44 }
   0xe   :  { %1726 = vmatmul.mubr.msk.bf16.gmra.mrb[4].mxu1 %vm115_vm0, %v1845_v9  ;;  %624 = vmatprep.subr.bf16.mxu0 %v2177_v6  ;;  %v2386_v39 = vld [vmem:[%s2963_s4 + $0xcc] ss:$16 sps:$4 sm:$0xff]   ;;  %v2392_v40 = vld [vmem:[%s2963_s4 + $0xc8] ss:$16 sps:$4 sm:$0xff]  }
   0xf   :  { %510 = vmatpush1.bf16.msra.mxu1 %v2201_v10  ;;  %253 = vmatprep.mubr.bf16.mxu1 %v2972_v1  ;;  %v2398_v41 = vld [vmem:[%s2963_s4 + $0xec] ss:$16 sps:$4 sm:$0xff]   ;;  %v2404_v42 = vld [vmem:[%s2963_s4 + $0xe8] ss:$16 sps:$4 sm:$0xff]   ;;  %v58_v13 = vrot.slane %v53_v46, %v57_v0  ;;  %v62_v25 = vrot.slane %v53_v46, %v61_v2 }
  0x10   :  { %511 = vmatprep.subr.bf16.mxu1 %v2207_v11 }
  0x11   :  { %625 = vmatpush1.bf16.msra.mxu0 %v2185_v7 }
  0x12   :  { %626 = vmatprep.subr.bf16.mxu0 %v2192_v8 }
  0x13   :  { %512 = vmatpush1.bf16.msra.mxu1 %v2213_v12 }
  0x14   :  { %513 = vmatprep.subr.bf16.mxu1 %v2227_v15  ;;  %1722 = vmatmul.mubr.msk.bf16.gmra.mrb[4].mxu0 %vm115_vm0, %v1845_v9 }
  0x15   :  { %627 = vmatpush1.bf16.msra.mxu0 %v2201_v10  ;;  %180 = vmatprep.mubr.bf16.mxu0 %v2972_v1 }
  0x16   :  { %1727 = vmatmul.mubr.msk.bf16.gmra.mrb[8].mxu1 %vm115_vm0, %v1852_v16  ;;  %628 = vmatprep.subr.bf16.mxu0 %v2207_v11 }
  0x17   :  { %514 = vmatpush1.bf16.msra.mxu1 %v2236_v17  ;;  %263 = vmatprep.mubr.bf16.mxu1 %v2972_v1 }
  0x18   :  { %515 = vmatprep.subr.bf16.mxu1 %v2243_v18 }
  0x19   :  { %629 = vmatpush1.bf16.msra.mxu0 %v2213_v12 }
  0x1a   :  { %630 = vmatprep.subr.bf16.mxu0 %v2227_v15 }
  0x1b   :  { %516 = vmatpush1.bf16.msra.mxu1 %v2252_v19 }
  0x1c   :  { %517 = vmatprep.subr.bf16.mxu1 %v2259_v20  ;;  %1723 = vmatmul.mubr.msk.bf16.gmra.mrb[8].mxu0 %vm115_vm0, %v1852_v16 }
  0x1d   :  { %631 = vmatpush1.bf16.msra.mxu0 %v2236_v17  ;;  %190 = vmatprep.mubr.bf16.mxu0 %v2972_v1 }
  0x1e   :  { %1728 = vmatmul.mubr.msk.bf16.gmra.mrb[12].mxu1 %vm115_vm0, %v1859_v21  ;;  %632 = vmatprep.subr.bf16.mxu0 %v2243_v18 }
  0x1f   :  { %518 = vmatpush1.bf16.msra.mxu1 %v2271_v22  ;;  %537 = vmatprep.mubr.bf16.mxu1 %v2972_v1 }
  0x20   :  { %519 = vmatprep.subr.bf16.mxu1 %v2278_v23 }
  0x21   :  { %633 = vmatpush1.bf16.msra.mxu0 %v2252_v19 }
  0x22   :  { %634 = vmatprep.subr.bf16.mxu0 %v2259_v20 }
  0x23   :  { %520 = vmatpush1.bf16.msra.mxu1 %v2287_v24 }
  0x24   :  { %546 = vmatprep.subr.bf16.mxu1 %v2297_v26  ;;  %1724 = vmatmul.mubr.msk.bf16.gmra.mrb[12].mxu0 %vm115_vm0, %v1859_v21 }
  0x25   :  { %635 = vmatpush1.bf16.msra.mxu0 %v2271_v22  ;;  %654 = vmatprep.mubr.bf16.mxu0 %v2972_v1 }
  0x26   :  { %538 = vmatmul.mubr.bf16.vlgmr.msra.gmra.mrb[16].mxu1 %v344_v27  ;;  %636 = vmatprep.subr.bf16.mxu0 %v2278_v23 }
  0x27   :  { %547 = vmatpush1.bf16.msra.mxu1 %v2306_v28  ;;  %578 = vmatprep.mubr.bf16.mxu1 %v2972_v1 }
  0x28   :  { %548 = vmatprep.subr.bf16.mxu1 %v2313_v29 }
  0x29   :  { %637 = vmatpush1.bf16.msra.mxu0 %v2287_v24 }
  0x2a   :  { %740 = vmatprep.subr.bf16.mxu0 %v2167_v4 }
  0x2b   :  { %549 = vmatpush1.bf16.msra.mxu1 %v2321_v30 }
  0x2c   :  { %550 = vmatprep.subr.bf16.mxu1 %v2328_v31 }
  0x2f   :  { %551 = vmatpush1.bf16.msra.mxu1 %v2337_v32 }
  0x30   :  { %552 = vmatprep.subr.bf16.mxu1 %v2344_v33 }
  0x33   :  { %553 = vmatpush1.bf16.msra.mxu1 %v2353_v34 }
  0x34   :  { %554 = vmatprep.subr.bf16.mxu1 %v2360_v35 }
  0x37   :  { %555 = vmatpush1.bf16.msra.mxu1 %v2367_v36 }
  0x38   :  { %556 = vmatprep.subr.bf16.mxu1 %v2374_v37 }
  0x3b   :  { %557 = vmatpush1.bf16.msra.mxu1 %v2380_v38 }
  0x3c   :  { %558 = vmatprep.subr.bf16.mxu1 %v2386_v39 }
  0x3f   :  { %559 = vmatpush1.bf16.msra.mxu1 %v2392_v40 }
  0x40   :  { %560 = vmatprep.subr.bf16.mxu1 %v2398_v41 }
  0x43   :  { %561 = vmatpush1.bf16.msra.mxu1 %v2404_v42 }
  0x44   :  { %663 = vmatprep.subr.bf16.mxu1 %v2297_v26 }
  0x46   :  { %579 = vmatmul.mubr.bf16.vlgmr.msra.gmra.mrb[20].mxu1 %v344_v27 }
  0x47   :  { %664 = vmatpush1.bf16.msra.mxu1 %v2306_v28  ;;  %695 = vmatprep.mubr.bf16.mxu1 %v2972_v1 }
  0x48   :  { %665 = vmatprep.subr.bf16.mxu1 %v2313_v29 }
  0x4b   :  { %666 = vmatpush1.bf16.msra.mxu1 %v2321_v30 }
  0x4c   :  { %667 = vmatprep.subr.bf16.mxu1 %v2328_v31 }
  0x4f   :  { %668 = vmatpush1.bf16.msra.mxu1 %v2337_v32 }
  0x50   :  { %669 = vmatprep.subr.bf16.mxu1 %v2344_v33 }
  0x53   :  { %670 = vmatpush1.bf16.msra.mxu1 %v2353_v34 }
  0x54   :  { %671 = vmatprep.subr.bf16.mxu1 %v2360_v35 }
  0x57   :  { %672 = vmatpush1.bf16.msra.mxu1 %v2367_v36 }
  0x58   :  { %673 = vmatprep.subr.bf16.mxu1 %v2374_v37 }
  0x5b   :  { %674 = vmatpush1.bf16.msra.mxu1 %v2380_v38 }
  0x5c   :  { %675 = vmatprep.subr.bf16.mxu1 %v2386_v39 }
  0x5f   :  { %676 = vmatpush1.bf16.msra.mxu1 %v2392_v40 }
  0x60   :  { %677 = vmatprep.subr.bf16.mxu1 %v2398_v41 }
  0x63   :  { %678 = vmatpush1.bf16.msra.mxu1 %v2404_v42 }
  0x64   :  { %781 = vmatprep.subr.bf16.mxu1 %v2297_v26 }
  0xd9   :  { %v2431_v49 = vpop.f32.mrb[0].mxu1 }
  0xda   :  { %v2433_v50 = vpop.f32.mrb[1].mxu1 }
  0xdb   :  { %v239_v52 = vpop.f32.mrb[2].mxu1 }
  0xdc   :  { %v2438_v53 = vadd.f32 %v239_v52, %v2429_v48  ;;  %v241_v54 = vpop.f32.mrb[3].mxu1 }
  0xdd   :  { %v2441_v55 = vadd.f32 %v241_v54, %v2435_v51 }
  0xdf   :  { %v162_v3 = vpop.f32.mrb[0].mxu0 }
  0xe0   :  { %v164_v14 = vpop.f32.mrb[1].mxu0 }
  0xe1   :  { %v245_v56 = vpop.f32.mrb[4].mxu1  ;;  %v166_v27 = vpop.f32.mrb[2].mxu0 }
  0xe2   :  { %v2444_v57 = vadd.f32 %v245_v56, %v2429_v48  ;;  %v247_v58 = vpop.f32.mrb[5].mxu1  ;;  %v2461_v47 = vadd.f32 %v166_v27, %v58_v13  ;;  %v168_v52 = vpop.f32.mrb[3].mxu0 }
  0xe3   :  { %v2447_v59 = vadd.f32 %v247_v58, %v2435_v51  ;;  %v249_v60 = vpop.f32.mrb[6].mxu1  ;;  %v2466_v56 = vadd.f32 %v168_v52, %v62_v25 }
  0xe4   :  { %v2450_v61 = vadd.f32 %v249_v60, %v2429_v48  ;;  %v251_v62 = vpop.f32.mrb[7].mxu1 }
  0xe5   :  { %2974 = vst [vmem:[#allocation4_spill] sm:$0xff] %v2447_v59  ;;  %v2453_v63 = vadd.f32 %v251_v62, %v2435_v51 }
  0xe6   :  { %2975 = vst [vmem:[#allocation5_spill] sm:$0xff] %v2450_v61 }
  0xe7   :  { %2976 = vst [vmem:[#allocation6_spill] sm:$0xff] %v2453_v63  ;;  %v172_v60 = vpop.f32.mrb[4].mxu0 }
  0xe8   :  { %v2471_v46 = vadd.f32 %v172_v60, %v58_v13  ;;  %v174_v0 = vpop.f32.mrb[5].mxu0 }
  0xe9   :  { %v255_v9 = vpop.f32.mrb[8].mxu1  ;;  %v176_v27 = vpop.f32.mrb[6].mxu0 }
  0xea   :  { %v2456_v16 = vadd.f32 %v255_v9, %v2429_v48  ;;  %v257_v21 = vpop.f32.mrb[9].mxu1  ;;  %v2481_v1 = vadd.f32 %v176_v27, %v58_v13 }
  0xeb   :  { %v2459_v43 = vadd.f32 %v257_v21, %v2435_v51  ;;  %v259_v45 = vpop.f32.mrb[10].mxu1  ;;  %v2476_v21 = vadd.f32 %v174_v0, %v62_v25  ;;  %v165_v0 = vadd.f32 %v164_v14, %v62_v25 }
  0xec   :  { %2977 = vst [vmem:[#allocation7_spill] sm:$0xff] %v2456_v16  ;;  %v2464_v54 = vadd.f32 %v259_v45, %v2429_v48  ;;  %v261_v44 = vpop.f32.mrb[11].mxu1  ;;  %2983 = vst [vmem:[#allocation13_spill] sm:$0xff] %v2481_v1 }
  0xed   :  { %2978 = vst [vmem:[#allocation8_spill] sm:$0xff] %v2459_v43  ;;  %v2469_v58 = vadd.f32 %v261_v44, %v2435_v51  ;;  %v178_v44 = vpop.f32.mrb[7].mxu0 }
  0xee   :  { %2979 = vst [vmem:[#allocation9_spill] sm:$0xff] %v2464_v54  ;;  %v2486_v54 = vadd.f32 %v178_v44, %v62_v25 }
  0xef   :  { %2980 = vst [vmem:[#allocation10_spill] sm:$0xff] %v2469_v58  ;;  %v182_v43 = vpop.f32.mrb[8].mxu0 }
  0xf0   :  { %2985 = vst [vmem:[#allocation15_spill] sm:$0xff] %v2486_v54  ;;  %v2491_v63 = vadd.f32 %v182_v43, %v58_v13 }
  0xf1   :  { %v265_v62 = vpop.f32.mrb[12].mxu1 }
  0xf2   :  { %v2474_v2 = vadd.f32 %v265_v62, %v2429_v48  ;;  %v267_v9 = vpop.f32.mrb[13].mxu1  ;;  %2987 = vst [vmem:[#allocation17_spill] sm:$0xff] %v2491_v63 }
  0xf3   :  { %v2479_v45 = vadd.f32 %v267_v9, %v2435_v51  ;;  %v269_v52 = vpop.f32.mrb[14].mxu1  ;;  %v184_v9 = vpop.f32.mrb[9].mxu0 }
  0xf4   :  { %2981 = vst [vmem:[#allocation11_spill] sm:$0xff] %v2474_v2  ;;  %v2484_v58 = vadd.f32 %v269_v52, %v2429_v48  ;;  %v271_v60 = vpop.f32.mrb[15].mxu1  ;;  %v163_v2 = vadd.f32 %v162_v3, %v58_v13  ;;  %v2493_v61 = vadd.f32 %v184_v9, %v62_v25  ;;  %v186_v1 = vpop.f32.mrb[10].mxu0 }
  0xf5   :  { %2982 = vst [vmem:[#allocation12_spill] sm:$0xff] %v2479_v45  ;;  %v2489_v62 = vadd.f32 %v271_v60, %v2435_v51  ;;  %v2495_v59 = vadd.f32 %v186_v1, %v58_v13  ;;  %v188_v44 = vpop.f32.mrb[11].mxu0 }
  0xf6   :  { %2984 = vst [vmem:[#allocation14_spill] sm:$0xff] %v2484_v58  ;;  %v2497_v60 = vadd.f32 %v188_v44, %v62_v25 }
  0xf7   :  { %2986 = vst [vmem:[#allocation16_spill] sm:$0xff] %v2489_v62  ;;  %v192_v3 = vpop.f32.mrb[12].mxu0 }
  0xf8   :  { %v2499_v14 = vadd.f32 %v192_v3, %v58_v13  ;;  %v194_v62 = vpop.f32.mrb[13].mxu0  ;;  %v236_v3 = vadd.f32 %v2431_v49, %v2429_v48 }
  0xf9   :  { %v539_v16 = vpop.f32.mrb[16].mxu1  ;;  %v2501_v43 = vadd.f32 %v194_v62, %v62_v25  ;;  %v196_v63 = vpop.f32.mrb[14].mxu0  ;;  %v238_v62 = vadd.f32 %v2433_v50, %v2435_v51 }
  0xfa   :  { %v587_v45 = vadd.f32 %v539_v16, %v163_v2  ;;  %v541_v27 = vpop.f32.mrb[17].mxu1  ;;  %v2503_v16 = vadd.f32 %v196_v63, %v58_v13  ;;  %v198_v2 = vpop.f32.mrb[15].mxu0 }
  0xfb   :  { %v588_v52 = vadd.f32 %v541_v27, %v165_v0  ;;  %v543_v58 = vpop.f32.mrb[18].mxu1  ;;  %2988 = vst [vmem:[#allocation18_spill] sm:$0xff] %v2501_v43  ;;  %v2505_v9 = vadd.f32 %v198_v2, %v62_v25 }
  0xfc   :  { %v544_v54 = vpop.f32.mrb[19].mxu1  ;;  %v1761_v58 = vmul.f32 -1.442695, %v587_v45 }
  0xfd   :  { %v1762_v0 = vmul.f32 -1.442695, %v588_v52 }
  0xff   :  { %1905 = vpow2.f32 %v1762_v0 }
 0x100   :  { %1907 = vpow2.f32 %v1761_v58  ;;  %v39_v58 = vld [vmem:[%s2966_s2] sm:$0xff] }
 0x109   :  { %v1906_v1 = vpop.eup %1905 }
 0x10a   :  { %v1908_v54 = vpop.eup %1907  ;;  %v600_v27 = vadd.f32 1.0, %v1906_v1 }
 0x10b   :  { %v594_v44 = vadd.f32 1.0, %v1908_v54 }
 0x10c   :  { %1909 = vrcp.f32 %v600_v27 }
 0x10d   :  { %1911 = vrcp.f32 %v594_v44 }
 0x116   :  { %v1910_v0 = vpop.eup %1909 }
 0x117   :  { %v1912_v48 = vpop.eup %1911  ;;  %v610_v1 = vmul.f32 %v1910_v0, %v39_v58 }
 0x119   :  { %v580_v43 = vpop.f32.mrb[20].mxu1 }
 0x11a   :  { %v589_v63 = vadd.f32 %v580_v43, %v236_v3  ;;  %v582_v13 = vpop.f32.mrb[21].mxu1 }
 0x11b   :  { %v590_v25 = vadd.f32 %v582_v13, %v238_v62  ;;  %v584_v52 = vpop.f32.mrb[22].mxu1 }
 0x11c   :  { %1913 = vtanh.f32 %v589_v63  ;;  %v585_v45 = vpop.f32.mrb[23].mxu1  ;;  %v2989_v63 = vmov 0  }
 0x11d   :  { %v1763_v2 = vmul.f32 -1.442695, %v590_v25 }
 0x11f   :  { %1915 = vpow2.f32 %v1763_v2 }
 0x126   :  { %v1914_v49 = vpop.eup %1913 }
 0x127   :  { %v611_v50 = vmul.f32 %v1914_v49, %v1912_v48 }
 0x129   :  { %v1916_v51 = vpop.eup %1915  ;;  %v2514_v54 = vadd.f32 %v611_v50, %v610_v1 }
 0x12a   :  { %v607_v43 = vadd.f32 1.0, %v1916_v51 }
 0x12b   :  { %1917 = vtanh.f32 %v2514_v54 }
 0x12c   :  { %1919 = vrcp.f32 %v607_v43 }
 0x135   :  { %v1918_v27 = vpop.eup %1917 }
 0x136   :  { %v1920_v44 = vpop.eup %1919 }
 0x137   :  { %v614_v3 = vmul.f32 %v1920_v44, %v1918_v27 }
 0x139   :  { %v615_v62 = vpack.c.bf16 %v614_v3, %v614_v3 }
 0x13b   :  { %616 = vst [vmem:[#allocation3] sm:$0xf] %v615_v62  ;;  %655 = vmatmul.mubr.bf16.vlgmr.msra.gmra.mrb[16].mxu0 %v615_v62  ;;  %696 = vmatmul.mubr.bf16.vlgmr.msra.gmra.mrb[24].mxu1 %v615_v62 }
 0x13c   :  { %741 = vmatpush1.bf16.msra.mxu0 %v2172_v5  ;;  %782 = vmatpush1.bf16.msra.mxu1 %v2306_v28 }
 0x13d   :  { %742 = vmatprep.subr.bf16.mxu0 %v2177_v6  ;;  %783 = vmatprep.subr.bf16.mxu1 %v2313_v29 }
 0x13e   :  { %772 = vmatprep.mubr.bf16.mxu0 %v2989_v63  ;;  %813 = vmatprep.mubr.bf16.mxu1 %v2989_v63 }
 0x140   :  { %743 = vmatpush1.bf16.msra.mxu0 %v2185_v7  ;;  %784 = vmatpush1.bf16.msra.mxu1 %v2321_v30 }
 0x141   :  { %744 = vmatprep.subr.bf16.mxu0 %v2192_v8  ;;  %785 = vmatprep.subr.bf16.mxu1 %v2328_v31 }
 0x144   :  { %745 = vmatpush1.bf16.msra.mxu0 %v2201_v10  ;;  %786 = vmatpush1.bf16.msra.mxu1 %v2337_v32 }
 0x145   :  { %746 = vmatprep.subr.bf16.mxu0 %v2207_v11  ;;  %787 = vmatprep.subr.bf16.mxu1 %v2344_v33 }
 0x148   :  { %747 = vmatpush1.bf16.msra.mxu0 %v2213_v12  ;;  %788 = vmatpush1.bf16.msra.mxu1 %v2353_v34 }
 0x149   :  { %748 = vmatprep.subr.bf16.mxu0 %v2227_v15  ;;  %789 = vmatprep.subr.bf16.mxu1 %v2360_v35 }
 0x14c   :  { %749 = vmatpush1.bf16.msra.mxu0 %v2236_v17  ;;  %790 = vmatpush1.bf16.msra.mxu1 %v2367_v36 }
 0x14d   :  { %750 = vmatprep.subr.bf16.mxu0 %v2243_v18  ;;  %791 = vmatprep.subr.bf16.mxu1 %v2374_v37 }
 0x150   :  { %751 = vmatpush1.bf16.msra.mxu0 %v2252_v19  ;;  %792 = vmatpush1.bf16.msra.mxu1 %v2380_v38 }
 0x151   :  { %752 = vmatprep.subr.bf16.mxu0 %v2259_v20  ;;  %793 = vmatprep.subr.bf16.mxu1 %v2386_v39 }
 0x154   :  { %753 = vmatpush1.bf16.msra.mxu0 %v2271_v22  ;;  %794 = vmatpush1.bf16.msra.mxu1 %v2392_v40 }
 0x155   :  { %754 = vmatprep.subr.bf16.mxu0 %v2278_v23  ;;  %795 = vmatprep.subr.bf16.mxu1 %v2398_v41 }
 0x158   :  { %755 = vmatpush1.bf16.msra.mxu0 %v2287_v24  ;;  %796 = vmatpush1.bf16.msra.mxu1 %v2404_v42 }
 0x159   :  { %858 = vmatprep.subr.bf16.mxu0 %v2167_v4  ;;  %899 = vmatprep.subr.bf16.mxu1 %v2297_v26 }
 0x20e   :  { %v656_v13 = vpop.f32.mrb[16].mxu0  ;;  %v697_v25 = vpop.f32.mrb[24].mxu1 }
 0x20f   :  { %v704_v52 = vadd.f32 %v656_v13, %v2461_v47  ;;  %v706_v45 = vadd.f32 %v697_v25, %v2438_v53  ;;  %v658_v2 = vpop.f32.mrb[17].mxu0  ;;  %v699_v0 = vpop.f32.mrb[25].mxu1 }
 0x210   :  { %v705_v58 = vadd.f32 %v658_v2, %v2466_v56  ;;  %v707_v48 = vadd.f32 %v699_v0, %v2441_v55  ;;  %v660_v49 = vpop.f32.mrb[18].mxu0  ;;  %v701_v1 = vpop.f32.mrb[26].mxu1 }
 0x211   :  { %v1764_v50 = vmul.f32 -1.442695, %v704_v52  ;;  %v661_v51 = vpop.f32.mrb[19].mxu0  ;;  %v702_v43 = vpop.f32.mrb[27].mxu1 }
 0x212   :  { %v1765_v27 = vmul.f32 -1.442695, %v705_v58  ;;  %v1766_v44 = vmul.f32 -1.442695, %v707_v48 }
 0x213   :  { %1921 = vpow2.f32 %v1764_v50 }
 0x214   :  { %1923 = vpow2.f32 %v1765_v27 }
 0x215   :  { %1925 = vpow2.f32 %v1766_v44 }
 0x216   :  { %1927 = vtanh.f32 %v706_v45 }
 0x21d   :  { %v1922_v3 = vpop.eup %1921 }
 0x21e   :  { %v1924_v62 = vpop.eup %1923  ;;  %v711_v47 = vadd.f32 1.0, %v1922_v3 }
 0x21f   :  { %v717_v53 = vadd.f32 1.0, %v1924_v62  ;;  %v1926_v56 = vpop.eup %1925  ;;  %v2990_v62 = vld [vmem:[#allocation4_spill] sm:$0xff] }
 0x220   :  { %1929 = vrcp.f32 %v711_v47  ;;  %v1928_v13 = vpop.eup %1927  ;;  %v724_v52 = vadd.f32 1.0, %v1926_v56 }
 0x221   :  { %1931 = vrcp.f32 %v717_v53 }
 0x222   :  { %1933 = vrcp.f32 %v724_v52 }
 0x22a   :  { %v1930_v55 = vpop.eup %1929 }
 0x22b   :  { %v1932_v25 = vpop.eup %1931  ;;  %v728_v2 = vmul.f32 %v1930_v55, %v1928_v13 }
 0x22c   :  { %v727_v0 = vmul.f32 %v1932_v25, %v2514_v54  ;;  %v1934_v48 = vpop.eup %1933 }
 0x22e   :  { %v2556_v58 = vadd.f32 %v728_v2, %v727_v0 }
 0x230   :  { %1935 = vtanh.f32 %v2556_v58 }
 0x23a   :  { %v1936_v49 = vpop.eup %1935 }
 0x23b   :  { %v731_v1 = vmul.f32 %v1936_v49, %v1934_v48 }
 0x23d   :  { %v732_v45 = vpack.c.bf16 %v731_v1, %v731_v1 }
 0x23f   :  { %734 = vst [vmem:[#allocation3 + $0x4] sm:$0xf] %v732_v45  ;;  %773 = vmatmul.mubr.bf16.vlgmr.msra.gmra.mrb[20].mxu0 %v732_v45  ;;  %814 = vmatmul.mubr.bf16.vlgmr.msra.gmra.mrb[28].mxu1 %v732_v45 }
 0x240   :  { %859 = vmatpush1.bf16.msra.mxu0 %v2172_v5  ;;  %900 = vmatpush1.bf16.msra.mxu1 %v2306_v28 }
 0x241   :  { %860 = vmatprep.subr.bf16.mxu0 %v2177_v6  ;;  %901 = vmatprep.subr.bf16.mxu1 %v2313_v29 }
 0x242   :  { %890 = vmatprep.mubr.bf16.mxu0 %v2989_v63  ;;  %931 = vmatprep.mubr.bf16.mxu1 %v2989_v63 }
 0x244   :  { %861 = vmatpush1.bf16.msra.mxu0 %v2185_v7  ;;  %902 = vmatpush1.bf16.msra.mxu1 %v2321_v30 }
 0x245   :  { %862 = vmatprep.subr.bf16.mxu0 %v2192_v8  ;;  %903 = vmatprep.subr.bf16.mxu1 %v2328_v31 }
 0x248   :  { %863 = vmatpush1.bf16.msra.mxu0 %v2201_v10  ;;  %904 = vmatpush1.bf16.msra.mxu1 %v2337_v32 }
 0x249   :  { %864 = vmatprep.subr.bf16.mxu0 %v2207_v11  ;;  %905 = vmatprep.subr.bf16.mxu1 %v2344_v33 }
 0x24c   :  { %865 = vmatpush1.bf16.msra.mxu0 %v2213_v12  ;;  %906 = vmatpush1.bf16.msra.mxu1 %v2353_v34 }
 0x24d   :  { %866 = vmatprep.subr.bf16.mxu0 %v2227_v15  ;;  %907 = vmatprep.subr.bf16.mxu1 %v2360_v35 }
 0x250   :  { %867 = vmatpush1.bf16.msra.mxu0 %v2236_v17  ;;  %908 = vmatpush1.bf16.msra.mxu1 %v2367_v36 }
 0x251   :  { %868 = vmatprep.subr.bf16.mxu0 %v2243_v18  ;;  %909 = vmatprep.subr.bf16.mxu1 %v2374_v37 }
 0x254   :  { %869 = vmatpush1.bf16.msra.mxu0 %v2252_v19  ;;  %910 = vmatpush1.bf16.msra.mxu1 %v2380_v38 }
 0x255   :  { %870 = vmatprep.subr.bf16.mxu0 %v2259_v20  ;;  %911 = vmatprep.subr.bf16.mxu1 %v2386_v39 }
 0x258   :  { %871 = vmatpush1.bf16.msra.mxu0 %v2271_v22  ;;  %912 = vmatpush1.bf16.msra.mxu1 %v2392_v40 }
 0x259   :  { %872 = vmatprep.subr.bf16.mxu0 %v2278_v23  ;;  %913 = vmatprep.subr.bf16.mxu1 %v2398_v41 }
 0x25c   :  { %873 = vmatpush1.bf16.msra.mxu0 %v2287_v24  ;;  %914 = vmatpush1.bf16.msra.mxu1 %v2404_v42 }
 0x25d   :  { %976 = vmatprep.subr.bf16.mxu0 %v2167_v4  ;;  %1017 = vmatprep.subr.bf16.mxu1 %v2297_v26 }
 0x312   :  { %v774_v54 = vpop.f32.mrb[20].mxu0  ;;  %v815_v50 = vpop.f32.mrb[28].mxu1 }
 0x313   :  { %v822_v51 = vadd.f32 %v774_v54, %v2471_v46  ;;  %v824_v43 = vadd.f32 %v815_v50, %v2444_v57  ;;  %v776_v27 = vpop.f32.mrb[21].mxu0  ;;  %v817_v44 = vpop.f32.mrb[29].mxu1 }
 0x314   :  { %v823_v3 = vadd.f32 %v776_v27, %v2476_v21  ;;  %v825_v47 = vadd.f32 %v817_v44, %v2990_v62  ;;  %v778_v53 = vpop.f32.mrb[22].mxu0  ;;  %v819_v56 = vpop.f32.mrb[30].mxu1 }
 0x315   :  { %v1767_v13 = vmul.f32 -1.442695, %v822_v51  ;;  %v779_v55 = vpop.f32.mrb[23].mxu0  ;;  %v820_v25 = vpop.f32.mrb[31].mxu1  ;;  %v2992_v53 = vld [vmem:[#allocation5_spill] sm:$0xff] }
 0x316   :  { %v1768_v2 = vmul.f32 -1.442695, %v823_v3  ;;  %v1769_v52 = vmul.f32 -1.442695, %v825_v47  ;;  %v2993_v25 = vld [vmem:[#allocation15_spill] sm:$0xff] }
 0x317   :  { %1937 = vpow2.f32 %v1767_v13 }
 0x318   :  { %1939 = vpow2.f32 %v1768_v2 }
 0x319   :  { %1941 = vpow2.f32 %v1769_v52  ;;  %v2994_v52 = vld [vmem:[#allocation6_spill] sm:$0xff] }
 0x31a   :  { %1943 = vtanh.f32 %v824_v43 }
 0x321   :  { %v1938_v0 = vpop.eup %1937 }
 0x322   :  { %v1940_v48 = vpop.eup %1939  ;;  %v829_v46 = vadd.f32 1.0, %v1938_v0 }
 0x323   :  { %v835_v57 = vadd.f32 1.0, %v1940_v48  ;;  %v1942_v21 = vpop.eup %1941 }
 0x324   :  { %1945 = vrcp.f32 %v829_v46  ;;  %v1944_v49 = vpop.eup %1943  ;;  %v842_v50 = vadd.f32 1.0, %v1942_v21 }
 0x325   :  { %1947 = vrcp.f32 %v835_v57 }
 0x326   :  { %1949 = vrcp.f32 %v842_v50 }
 0x32e   :  { %v1946_v1 = vpop.eup %1945 }
 0x32f   :  { %v1948_v45 = vpop.eup %1947  ;;  %v846_v54 = vmul.f32 %v1946_v1, %v1944_v49 }
 0x330   :  { %v845_v51 = vmul.f32 %v1948_v45, %v2556_v58  ;;  %v1950_v44 = vpop.eup %1949  ;;  %v2991_v58 = vld [vmem:[#allocation13_spill] sm:$0xff] }
 0x332   :  { %v2598_v27 = vadd.f32 %v846_v54, %v845_v51 }
 0x334   :  { %1951 = vtanh.f32 %v2598_v27 }
 0x33e   :  { %v1952_v3 = vpop.eup %1951 }
 0x33f   :  { %v849_v62 = vmul.f32 %v1952_v3, %v1950_v44 }
 0x341   :  { %v850_v43 = vpack.c.bf16 %v849_v62, %v849_v62 }
 0x343   :  { %852 = vst [vmem:[#allocation3 + $0x8] sm:$0xf] %v850_v43  ;;  %891 = vmatmul.mubr.bf16.vlgmr.msra.gmra.mrb[24].mxu0 %v850_v43  ;;  %932 = vmatmul.mubr.bf16.vlgmr.msra.gmra.mrb[32].mxu1 %v850_v43 }
 0x344   :  { %977 = vmatpush1.bf16.msra.mxu0 %v2172_v5  ;;  %1018 = vmatpush1.bf16.msra.mxu1 %v2306_v28 }
 0x345   :  { %978 = vmatprep.subr.bf16.mxu0 %v2177_v6  ;;  %1019 = vmatprep.subr.bf16.mxu1 %v2313_v29 }
 0x346   :  { %1008 = vmatprep.mubr.bf16.mxu0 %v2989_v63  ;;  %1049 = vmatprep.mubr.bf16.mxu1 %v2989_v63 }
 0x348   :  { %979 = vmatpush1.bf16.msra.mxu0 %v2185_v7  ;;  %1020 = vmatpush1.bf16.msra.mxu1 %v2321_v30 }
 0x349   :  { %980 = vmatprep.subr.bf16.mxu0 %v2192_v8  ;;  %1021 = vmatprep.subr.bf16.mxu1 %v2328_v31 }
 0x34c   :  { %981 = vmatpush1.bf16.msra.mxu0 %v2201_v10  ;;  %1022 = vmatpush1.bf16.msra.mxu1 %v2337_v32 }
 0x34d   :  { %982 = vmatprep.subr.bf16.mxu0 %v2207_v11  ;;  %1023 = vmatprep.subr.bf16.mxu1 %v2344_v33 }
 0x350   :  { %983 = vmatpush1.bf16.msra.mxu0 %v2213_v12  ;;  %1024 = vmatpush1.bf16.msra.mxu1 %v2353_v34 }
 0x351   :  { %984 = vmatprep.subr.bf16.mxu0 %v2227_v15  ;;  %1025 = vmatprep.subr.bf16.mxu1 %v2360_v35 }
 0x354   :  { %985 = vmatpush1.bf16.msra.mxu0 %v2236_v17  ;;  %1026 = vmatpush1.bf16.msra.mxu1 %v2367_v36 }
 0x355   :  { %986 = vmatprep.subr.bf16.mxu0 %v2243_v18  ;;  %1027 = vmatprep.subr.bf16.mxu1 %v2374_v37 }
 0x358   :  { %987 = vmatpush1.bf16.msra.mxu0 %v2252_v19  ;;  %1028 = vmatpush1.bf16.msra.mxu1 %v2380_v38 }
 0x359   :  { %988 = vmatprep.subr.bf16.mxu0 %v2259_v20  ;;  %1029 = vmatprep.subr.bf16.mxu1 %v2386_v39 }
 0x35c   :  { %989 = vmatpush1.bf16.msra.mxu0 %v2271_v22  ;;  %1030 = vmatpush1.bf16.msra.mxu1 %v2392_v40 }
 0x35d   :  { %990 = vmatprep.subr.bf16.mxu0 %v2278_v23  ;;  %1031 = vmatprep.subr.bf16.mxu1 %v2398_v41 }
 0x360   :  { %991 = vmatpush1.bf16.msra.mxu0 %v2287_v24  ;;  %1032 = vmatpush1.bf16.msra.mxu1 %v2404_v42 }
 0x361   :  { %1094 = vmatprep.subr.bf16.mxu0 %v2167_v4  ;;  %1135 = vmatprep.subr.bf16.mxu1 %v2297_v26 }
 0x416   :  { %v892_v5 = vpop.f32.mrb[24].mxu0  ;;  %v933_v6 = vpop.f32.mrb[32].mxu1 }
 0x417   :  { %v940_v47 = vadd.f32 %v892_v5, %v2991_v58  ;;  %v942_v56 = vadd.f32 %v933_v6, %v2992_v53  ;;  %v894_v13 = vpop.f32.mrb[25].mxu0  ;;  %v935_v55 = vpop.f32.mrb[33].mxu1 }
 0x418   :  { %v941_v2 = vadd.f32 %v894_v13, %v2993_v25  ;;  %v943_v0 = vadd.f32 %v935_v55, %v2994_v52  ;;  %v896_v48 = vpop.f32.mrb[26].mxu0  ;;  %v937_v46 = vpop.f32.mrb[34].mxu1  ;;  %v2646_v25 = vld [vmem:[%s2963_s4] ss:$16 sps:$4 sm:$0xff]  }
 0x419   :  { %v1770_v57 = vmul.f32 -1.442695, %v940_v47  ;;  %v897_v21 = vpop.f32.mrb[27].mxu0  ;;  %v938_v49 = vpop.f32.mrb[35].mxu1 }
 0x41a   :  { %v1771_v4 = vmul.f32 -1.442695, %v941_v2  ;;  %v1772_v1 = vmul.f32 -1.442695, %v943_v0 }
 0x41b   :  { %1953 = vpow2.f32 %v1770_v57 }
 0x41c   :  { %1955 = vpow2.f32 %v1771_v4 }
 0x41d   :  { %1957 = vpow2.f32 %v1772_v1 }
 0x41e   :  { %1959 = vtanh.f32 %v942_v56 }
 0x425   :  { %v1954_v45 = vpop.eup %1953 }
 0x426   :  { %v1956_v54 = vpop.eup %1955  ;;  %v947_v50 = vadd.f32 1.0, %v1954_v45 }
 0x427   :  { %v953_v51 = vadd.f32 1.0, %v1956_v54  ;;  %v1958_v44 = vpop.eup %1957 }
 0x428   :  { %1961 = vrcp.f32 %v947_v50  ;;  %v1960_v3 = vpop.eup %1959  ;;  %v960_v6 = vadd.f32 1.0, %v1958_v44 }
 0x429   :  { %1963 = vrcp.f32 %v953_v51 }
 0x42a   :  { %1965 = vrcp.f32 %v960_v6 }
 0x432   :  { %v1962_v62 = vpop.eup %1961 }
 0x433   :  { %v1964_v43 = vpop.eup %1963  ;;  %v964_v5 = vmul.f32 %v1962_v62, %v1960_v3 }
 0x434   :  { %v963_v58 = vmul.f32 %v1964_v43, %v2598_v27  ;;  %v1966_v53 = vpop.eup %1965  ;;  %v2653_v27 = vld [vmem:[%s2963_s4 + $0x24] ss:$16 sps:$4 sm:$0xff]  }
 0x436   :  { %v2640_v47 = vadd.f32 %v964_v5, %v963_v58  ;;  %v2709_v58 = vld [vmem:[%s2963_s4 + $0x20] ss:$16 sps:$4 sm:$0xff]  }
 0x438   :  { %1967 = vtanh.f32 %v2640_v47 }
 0x442   :  { %v1968_v13 = vpop.eup %1967 }
 0x443   :  { %v967_v55 = vmul.f32 %v1968_v13, %v1966_v53  ;;  %v2998_v13 = vld [vmem:[#allocation9_spill] sm:$0xff] }
 0x445   :  { %v968_v56 = vpack.c.bf16 %v967_v55, %v967_v55 }
 0x447   :  { %970 = vst [vmem:[#allocation3 + $0xc] sm:$0xf] %v968_v56  ;;  %1009 = vmatmul.mubr.bf16.vlgmr.msra.gmra.mrb[28].mxu0 %v968_v56  ;;  %1050 = vmatmul.mubr.bf16.vlgmr.msra.gmra.mrb[36].mxu1 %v968_v56 }
 0x448   :  { %1095 = vmatpush1.bf16.msra.mxu0 %v2646_v25  ;;  %1136 = vmatpush1.bf16.msra.mxu1 %v2306_v28 }
 0x449   :  { %1096 = vmatprep.subr.bf16.mxu0 %v2653_v27  ;;  %1137 = vmatprep.subr.bf16.mxu1 %v2313_v29 }
 0x44a   :  { %1126 = vmatprep.mubr.bf16.mxu0 %v2989_v63  ;;  %1167 = vmatprep.mubr.bf16.mxu1 %v2989_v63 }
 0x44c   :  { %1097 = vmatpush1.bf16.msra.mxu0 %v2185_v7  ;;  %1138 = vmatpush1.bf16.msra.mxu1 %v2321_v30  ;;  %v2688_v7 = vld [vmem:[%s2963_s4 + $0x4] ss:$16 sps:$4 sm:$0xff]  }
 0x44d   :  { %1098 = vmatprep.subr.bf16.mxu0 %v2192_v8  ;;  %1139 = vmatprep.subr.bf16.mxu1 %v2328_v31 }
 0x450   :  { %1099 = vmatpush1.bf16.msra.mxu0 %v2201_v10  ;;  %1140 = vmatpush1.bf16.msra.mxu1 %v2337_v32 }
 0x451   :  { %1100 = vmatprep.subr.bf16.mxu0 %v2207_v11  ;;  %1141 = vmatprep.subr.bf16.mxu1 %v2344_v33  ;;  %v2995_v11 = vld [vmem:[#allocation17_spill] sm:$0xff] }
 0x454   :  { %1101 = vmatpush1.bf16.msra.mxu0 %v2213_v12  ;;  %1142 = vmatpush1.bf16.msra.mxu1 %v2353_v34 }
 0x455   :  { %1102 = vmatprep.subr.bf16.mxu0 %v2227_v15  ;;  %1143 = vmatprep.subr.bf16.mxu1 %v2360_v35  ;;  %v2996_v15 = vld [vmem:[#allocation7_spill] sm:$0xff] }
 0x458   :  { %1103 = vmatpush1.bf16.msra.mxu0 %v2236_v17  ;;  %1144 = vmatpush1.bf16.msra.mxu1 %v2367_v36 }
 0x459   :  { %1104 = vmatprep.subr.bf16.mxu0 %v2243_v18  ;;  %1145 = vmatprep.subr.bf16.mxu1 %v2374_v37 }
 0x45c   :  { %1105 = vmatpush1.bf16.msra.mxu0 %v2252_v19  ;;  %1146 = vmatpush1.bf16.msra.mxu1 %v2380_v38 }
 0x45d   :  { %1106 = vmatprep.subr.bf16.mxu0 %v2259_v20  ;;  %1147 = vmatprep.subr.bf16.mxu1 %v2386_v39 }
 0x460   :  { %1107 = vmatpush1.bf16.msra.mxu0 %v2271_v22  ;;  %1148 = vmatpush1.bf16.msra.mxu1 %v2392_v40  ;;  %v2997_v22 = vld [vmem:[#allocation8_spill] sm:$0xff] }
 0x461   :  { %1108 = vmatprep.subr.bf16.mxu0 %v2278_v23  ;;  %1149 = vmatprep.subr.bf16.mxu1 %v2398_v41 }
 0x464   :  { %1109 = vmatpush1.bf16.msra.mxu0 %v2287_v24  ;;  %1150 = vmatpush1.bf16.msra.mxu1 %v2404_v42 }
 0x465   :  { %1212 = vmatprep.subr.bf16.mxu0 %v2688_v7  ;;  %1253 = vmatprep.subr.bf16.mxu1 %v2297_v26 }
 0x51a   :  { %v1010_v8 = vpop.f32.mrb[28].mxu0  ;;  %v1051_v10 = vpop.f32.mrb[36].mxu1 }
 0x51b   :  { %v1058_v12 = vadd.f32 %v1010_v8, %v2995_v11  ;;  %v1060_v17 = vadd.f32 %v1051_v10, %v2996_v15  ;;  %v1012_v18 = vpop.f32.mrb[29].mxu0  ;;  %v1053_v19 = vpop.f32.mrb[37].mxu1  ;;  %v2999_v11 = vld [vmem:[#allocation10_spill] sm:$0xff] }
 0x51c   :  { %v1059_v20 = vadd.f32 %v1012_v18, %v2493_v61  ;;  %v1061_v23 = vadd.f32 %v1053_v19, %v2997_v22  ;;  %v1014_v24 = vpop.f32.mrb[30].mxu0  ;;  %v1055_v2 = vpop.f32.mrb[38].mxu1 }
 0x51d   :  { %v1773_v52 = vmul.f32 -1.442695, %v1058_v12  ;;  %v1015_v0 = vpop.f32.mrb[31].mxu0  ;;  %v1056_v48 = vpop.f32.mrb[39].mxu1 }
 0x51e   :  { %v1774_v46 = vmul.f32 -1.442695, %v1059_v20  ;;  %v1775_v26 = vmul.f32 -1.442695, %v1061_v23 }
 0x51f   :  { %1969 = vpow2.f32 %v1773_v52 }
 0x520   :  { %1971 = vpow2.f32 %v1774_v46 }
 0x521   :  { %1973 = vpow2.f32 %v1775_v26 }
 0x522   :  { %1975 = vtanh.f32 %v1060_v17 }
 0x529   :  { %v1970_v57 = vpop.eup %1969 }
 0x52a   :  { %v1972_v21 = vpop.eup %1971  ;;  %v1065_v49 = vadd.f32 1.0, %v1970_v57 }
 0x52b   :  { %v1071_v4 = vadd.f32 1.0, %v1972_v21  ;;  %v1974_v61 = vpop.eup %1973 }
 0x52c   :  { %1977 = vrcp.f32 %v1065_v49  ;;  %v1976_v1 = vpop.eup %1975  ;;  %v1078_v51 = vadd.f32 1.0, %v1974_v61 }
 0x52d   :  { %1979 = vrcp.f32 %v1071_v4 }
 0x52e   :  { %1981 = vrcp.f32 %v1078_v51  ;;  %v2089_v51 = vld [vmem:[%s2963_s4 + $0x8c] ss:$16 sps:$4 sm:$0xff]  }
 0x536   :  { %v1978_v45 = vpop.eup %1977 }
 0x537   :  { %v1980_v54 = vpop.eup %1979  ;;  %v1082_v50 = vmul.f32 %v1978_v45, %v1976_v1  ;;  %v2082_v1 = vld [vmem:[%s2963_s4 + $0x8] ss:$16 sps:$4 sm:$0xff]   ;;  %v2083_v45 = vld [vmem:[%s2963_s4 + $0x2c] ss:$16 sps:$4 sm:$0xff]  }
 0x538   :  { %v1081_v44 = vmul.f32 %v1980_v54, %v2640_v47  ;;  %v1982_v62 = vpop.eup %1981  ;;  %v2087_v54 = vld [vmem:[%s2963_s4 + $0x6c] ss:$16 sps:$4 sm:$0xff]  }
 0x53a   :  { %v2697_v3 = vadd.f32 %v1082_v50, %v1081_v44  ;;  %v2088_v50 = vld [vmem:[%s2963_s4 + $0x68] ss:$16 sps:$4 sm:$0xff]  }
 0x53b   :  { %v2090_v44 = vld [vmem:[%s2963_s4 + $0x88] ss:$16 sps:$4 sm:$0xff]  }
 0x53c   :  { %1983 = vtanh.f32 %v2697_v3 }
 0x546   :  { %v1984_v43 = vpop.eup %1983 }
 0x547   :  { %v1085_v5 = vmul.f32 %v1984_v43, %v1982_v62  ;;  %v2092_v62 = vld [vmem:[%s2963_s4 + $0xa8] ss:$16 sps:$4 sm:$0xff]   ;;  %v2093_v43 = vld [vmem:[%s2963_s4 + $0xcc] ss:$16 sps:$4 sm:$0xff]  }
 0x549   :  { %v1086_v6 = vpack.c.bf16 %v1085_v5, %v1085_v5  ;;  %v2094_v5 = vld [vmem:[%s2963_s4 + $0xc8] ss:$16 sps:$4 sm:$0xff]  }
 0x54b   :  { %1088 = vst [vmem:[#allocation3 + $0x10] sm:$0xf] %v1086_v6  ;;  %1127 = vmatmul.mubr.bf16.vlgmr.msra.gmra.mrb[32].mxu0 %v1086_v6  ;;  %1168 = vmatmul.mubr.bf16.vlgmr.msra.gmra.mrb[40].mxu1 %v1086_v6  ;;  %v2095_v6 = vld [vmem:[%s2963_s4 + $0xec] ss:$16 sps:$4 sm:$0xff]  }
 0x54c   :  { %1213 = vmatpush1.bf16.msra.mxu0 %v2646_v25  ;;  %1254 = vmatpush1.bf16.msra.mxu1 %v2306_v28  ;;  %v2716_v28 = vld [vmem:[%s2963_s4 + $0x44] ss:$16 sps:$4 sm:$0xff]  }
 0x54d   :  { %1214 = vmatprep.subr.bf16.mxu0 %v2653_v27  ;;  %1255 = vmatprep.subr.bf16.mxu1 %v2313_v29  ;;  %v2723_v29 = vld [vmem:[%s2963_s4 + $0x40] ss:$16 sps:$4 sm:$0xff]  }
 0x54e   :  { %1244 = vmatprep.mubr.bf16.mxu0 %v2989_v63  ;;  %1285 = vmatprep.mubr.bf16.mxu1 %v2989_v63 }
 0x550   :  { %1215 = vmatpush1.bf16.msra.mxu0 %v2709_v58  ;;  %1256 = vmatpush1.bf16.msra.mxu1 %v2321_v30  ;;  %v2730_v30 = vld [vmem:[%s2963_s4 + $0x64] ss:$16 sps:$4 sm:$0xff]  }
 0x551   :  { %1216 = vmatprep.subr.bf16.mxu0 %v2716_v28  ;;  %1257 = vmatprep.subr.bf16.mxu1 %v2328_v31  ;;  %v2737_v31 = vld [vmem:[%s2963_s4 + $0x60] ss:$16 sps:$4 sm:$0xff]  }
 0x554   :  { %1217 = vmatpush1.bf16.msra.mxu0 %v2723_v29  ;;  %1258 = vmatpush1.bf16.msra.mxu1 %v2337_v32  ;;  %v2744_v32 = vld [vmem:[%s2963_s4 + $0x84] ss:$16 sps:$4 sm:$0xff]  }
 0x555   :  { %1218 = vmatprep.subr.bf16.mxu0 %v2730_v30  ;;  %1259 = vmatprep.subr.bf16.mxu1 %v2344_v33  ;;  %v2751_v33 = vld [vmem:[%s2963_s4 + $0x80] ss:$16 sps:$4 sm:$0xff]  }
 0x558   :  { %1219 = vmatpush1.bf16.msra.mxu0 %v2737_v31  ;;  %1260 = vmatpush1.bf16.msra.mxu1 %v2353_v34  ;;  %v2758_v34 = vld [vmem:[%s2963_s4 + $0xa4] ss:$16 sps:$4 sm:$0xff]  }
 0x559   :  { %1220 = vmatprep.subr.bf16.mxu0 %v2744_v32  ;;  %1261 = vmatprep.subr.bf16.mxu1 %v2360_v35  ;;  %v2765_v35 = vld [vmem:[%s2963_s4 + $0xa0] ss:$16 sps:$4 sm:$0xff]  }
 0x55c   :  { %1221 = vmatpush1.bf16.msra.mxu0 %v2751_v33  ;;  %1262 = vmatpush1.bf16.msra.mxu1 %v2367_v36  ;;  %v2772_v36 = vld [vmem:[%s2963_s4 + $0xc4] ss:$16 sps:$4 sm:$0xff]  }
 0x55d   :  { %1222 = vmatprep.subr.bf16.mxu0 %v2758_v34  ;;  %1263 = vmatprep.subr.bf16.mxu1 %v2374_v37  ;;  %v2779_v37 = vld [vmem:[%s2963_s4 + $0xc0] ss:$16 sps:$4 sm:$0xff]  }
 0x560   :  { %1223 = vmatpush1.bf16.msra.mxu0 %v2765_v35  ;;  %1264 = vmatpush1.bf16.msra.mxu1 %v2380_v38  ;;  %v2786_v38 = vld [vmem:[%s2963_s4 + $0xe4] ss:$16 sps:$4 sm:$0xff]  }
 0x561   :  { %1224 = vmatprep.subr.bf16.mxu0 %v2772_v36  ;;  %1265 = vmatprep.subr.bf16.mxu1 %v2386_v39  ;;  %v2793_v39 = vld [vmem:[%s2963_s4 + $0xe0] ss:$16 sps:$4 sm:$0xff]  }
 0x564   :  { %1225 = vmatpush1.bf16.msra.mxu0 %v2779_v37  ;;  %1266 = vmatpush1.bf16.msra.mxu1 %v2392_v40  ;;  %v2081_v40 = vld [vmem:[%s2963_s4 + $0xc] ss:$16 sps:$4 sm:$0xff]  }
 0x565   :  { %1226 = vmatprep.subr.bf16.mxu0 %v2786_v38  ;;  %1267 = vmatprep.subr.bf16.mxu1 %v2398_v41 }
 0x568   :  { %1227 = vmatpush1.bf16.msra.mxu0 %v2793_v39  ;;  %1268 = vmatpush1.bf16.msra.mxu1 %v2404_v42 }
 0x569   :  { %1330 = vmatprep.subr.bf16.mxu0 %v2688_v7  ;;  %1371 = vmatprep.subr.bf16.mxu1 %v2081_v40 }
 0x61e   :  { %v1128_v47 = vpop.f32.mrb[32].mxu0  ;;  %v1169_v53 = vpop.f32.mrb[40].mxu1 }
 0x61f   :  { %v1176_v41 = vadd.f32 %v1128_v47, %v2495_v59  ;;  %v1178_v55 = vadd.f32 %v1169_v53, %v2998_v13  ;;  %v1130_v56 = vpop.f32.mrb[33].mxu0  ;;  %v1171_v8 = vpop.f32.mrb[41].mxu1 }
 0x620   :  { %v1177_v10 = vadd.f32 %v1130_v56, %v2497_v60  ;;  %v1179_v12 = vadd.f32 %v1171_v8, %v2999_v11  ;;  %v1132_v42 = vpop.f32.mrb[34].mxu0  ;;  %v1173_v15 = vpop.f32.mrb[42].mxu1 }
 0x621   :  { %v1776_v7 = vmul.f32 -1.442695, %v1176_v41  ;;  %v1133_v17 = vpop.f32.mrb[35].mxu0  ;;  %v1174_v18 = vpop.f32.mrb[43].mxu1 }
 0x622   :  { %v1777_v19 = vmul.f32 -1.442695, %v1177_v10  ;;  %v1778_v20 = vmul.f32 -1.442695, %v1179_v12 }
 0x623   :  { %1985 = vpow2.f32 %v1776_v7 }
 0x624   :  { %1987 = vpow2.f32 %v1777_v19 }
 0x625   :  { %1989 = vpow2.f32 %v1778_v20 }
 0x626   :  { %1991 = vtanh.f32 %v1178_v55 }
 0x62d   :  { %v1986_v22 = vpop.eup %1985 }
 0x62e   :  { %v1988_v23 = vpop.eup %1987  ;;  %v1183_v59 = vadd.f32 1.0, %v1986_v22 }
 0x62f   :  { %v1189_v24 = vadd.f32 1.0, %v1988_v23  ;;  %v1990_v60 = vpop.eup %1989 }
 0x630   :  { %1993 = vrcp.f32 %v1183_v59  ;;  %v1992_v2 = vpop.eup %1991  ;;  %v1196_v46 = vadd.f32 1.0, %v1990_v60  ;;  %v1895_v60 = vld [vmem:[%s2967_s6 + $0x8] sm:$0xff]  }
 0x631   :  { %1995 = vrcp.f32 %v1189_v24 }
 0x632   :  { %1997 = vrcp.f32 %v1196_v46  ;;  %v1899_v46 = vld [vmem:[%s2967_s6 + $0x28] sm:$0xff]  }
 0x63a   :  { %v1994_v52 = vpop.eup %1993 }
 0x63b   :  { %v1996_v0 = vpop.eup %1995  ;;  %v1200_v48 = vmul.f32 %v1994_v52, %v1992_v2  ;;  %v1894_v2 = vld [vmem:[#allocation3] sm:$0xff]   ;;  %v1896_v52 = vld [vmem:[%s2967_s6 + $0x10] sm:$0xff]  }
 0x63c   :  { %v1199_v26 = vmul.f32 %v1996_v0, %v2697_v3  ;;  %v1998_v21 = vpop.eup %1997  ;;  %v2091_v3 = vld [vmem:[%s2963_s4 + $0xac] ss:$16 sps:$4 sm:$0xff]  }
 0x63d   :  { %v1897_v0 = vld [vmem:[%s2967_s6 + $0x18] sm:$0xff]  }
 0x63e   :  { %v2806_v57 = vadd.f32 %v1200_v48, %v1199_v26  ;;  %v1898_v48 = vld [vmem:[%s2967_s6 + $0x20] sm:$0xff]   ;;  %v1900_v26 = vld [vmem:[%s2967_s6 + $0x30] sm:$0xff]  }
 0x640   :  { %1999 = vtanh.f32 %v2806_v57 }
 0x64a   :  { %v2000_v49 = vpop.eup %1999 }
 0x64b   :  { %v1203_v4 = vmul.f32 %v2000_v49, %v1998_v21  ;;  %v1902_v21 = vld [vmem:[#allocation3 + $0x8] sm:$0xff]  }
 0x64d   :  { %v1204_v61 = vpack.c.bf16 %v1203_v4, %v1203_v4 }
 0x64f   :  { %1206 = vst [vmem:[#allocation3 + $0x14] sm:$0xf] %v1204_v61  ;;  %1245 = vmatmul.mubr.bf16.vlgmr.msra.gmra.mrb[36].mxu0 %v1204_v61  ;;  %1286 = vmatmul.mubr.bf16.vlgmr.msra.gmra.mrb[44].mxu1 %v1204_v61 }
 0x650   :  { %1331 = vmatpush1.bf16.msra.mxu0 %v2646_v25  ;;  %1372 = vmatpush1.bf16.msra.mxu1 %v2082_v1  ;;  %v2084_v25 = vld [vmem:[%s2963_s4 + $0x28] ss:$16 sps:$4 sm:$0xff]  }
 0x651   :  { %1332 = vmatprep.subr.bf16.mxu0 %v2653_v27  ;;  %1373 = vmatprep.subr.bf16.mxu1 %v2083_v45  ;;  %v2085_v27 = vld [vmem:[%s2963_s4 + $0x4c] ss:$16 sps:$4 sm:$0xff]   ;;  %v3003_v45 = vld [vmem:[#allocation14_spill] sm:$0xff] }
 0x652   :  { %1362 = vmatprep.mubr.bf16.mxu0 %v2989_v63  ;;  %1403 = vmatprep.mubr.bf16.mxu1 %v2989_v63  ;;  %v2086_v63 = vld [vmem:[%s2963_s4 + $0x48] ss:$16 sps:$4 sm:$0xff]  }
 0x654   :  { %1333 = vmatpush1.bf16.msra.mxu0 %v2709_v58  ;;  %1374 = vmatpush1.bf16.msra.mxu1 %v2084_v25  ;;  %v2096_v58 = vld [vmem:[%s2963_s4 + $0xe8] ss:$16 sps:$4 sm:$0xff]  }
 0x655   :  { %1334 = vmatprep.subr.bf16.mxu0 %v2716_v28  ;;  %1375 = vmatprep.subr.bf16.mxu1 %v2085_v27  ;;  %v1893_v28 = vld [vmem:[%s2967_s6] sm:$0xff]  }
 0x656   :  { %v1903_v49 = vld [vmem:[#allocation3 + $0x10] sm:$0xff]  }
 0x658   :  { %1335 = vmatpush1.bf16.msra.mxu0 %v2723_v29  ;;  %1376 = vmatpush1.bf16.msra.mxu1 %v2086_v63 }
 0x659   :  { %1336 = vmatprep.subr.bf16.mxu0 %v2730_v30  ;;  %1377 = vmatprep.subr.bf16.mxu1 %v2087_v54 }
 0x65c   :  { %1337 = vmatpush1.bf16.msra.mxu0 %v2737_v31  ;;  %1378 = vmatpush1.bf16.msra.mxu1 %v2088_v50  ;;  %v3004_v50 = vld [vmem:[#allocation16_spill] sm:$0xff] }
 0x65d   :  { %1338 = vmatprep.subr.bf16.mxu0 %v2744_v32  ;;  %1379 = vmatprep.subr.bf16.mxu1 %v2089_v51  ;;  %v3000_v32 = vld [vmem:[#allocation11_spill] sm:$0xff] }
 0x660   :  { %1339 = vmatpush1.bf16.msra.mxu0 %v2751_v33  ;;  %1380 = vmatpush1.bf16.msra.mxu1 %v2090_v44 }
 0x661   :  { %1340 = vmatprep.subr.bf16.mxu0 %v2758_v34  ;;  %1381 = vmatprep.subr.bf16.mxu1 %v2091_v3 }
 0x664   :  { %1341 = vmatpush1.bf16.msra.mxu0 %v2765_v35  ;;  %1382 = vmatpush1.bf16.msra.mxu1 %v2092_v62 }
 0x665   :  { %1342 = vmatprep.subr.bf16.mxu0 %v2772_v36  ;;  %1383 = vmatprep.subr.bf16.mxu1 %v2093_v43  ;;  %v3001_v36 = vld [vmem:[#allocation18_spill] sm:$0xff] }
 0x668   :  { %1343 = vmatpush1.bf16.msra.mxu0 %v2779_v37  ;;  %1384 = vmatpush1.bf16.msra.mxu1 %v2094_v5 }
 0x669   :  { %1344 = vmatprep.subr.bf16.mxu0 %v2786_v38  ;;  %1385 = vmatprep.subr.bf16.mxu1 %v2095_v6  ;;  %v3002_v38 = vld [vmem:[#allocation12_spill] sm:$0xff] }
 0x66c   :  { %1345 = vmatpush1.bf16.msra.mxu0 %v2793_v39  ;;  %1386 = vmatpush1.bf16.msra.mxu1 %v2096_v58 }
 0x66d   :  { %1810 = vmatprep.subr.bf16.mxu0 %v1893_v28 }
 0x722   :  { %v1246_v29 = vpop.f32.mrb[36].mxu0  ;;  %v1287_v30 = vpop.f32.mrb[44].mxu1 }
 0x723   :  { %v1294_v31 = vadd.f32 %v1246_v29, %v2499_v14  ;;  %v1296_v33 = vadd.f32 %v1287_v30, %v3000_v32  ;;  %v1248_v34 = vpop.f32.mrb[37].mxu0  ;;  %v1289_v35 = vpop.f32.mrb[45].mxu1 }
 0x724   :  { %v1295_v37 = vadd.f32 %v1248_v34, %v3001_v36  ;;  %v1297_v39 = vadd.f32 %v1289_v35, %v3002_v38  ;;  %v1250_v40 = vpop.f32.mrb[38].mxu0  ;;  %v1291_v47 = vpop.f32.mrb[46].mxu1 }
 0x725   :  { %v1779_v53 = vmul.f32 -1.442695, %v1294_v31  ;;  %v1251_v41 = vpop.f32.mrb[39].mxu0  ;;  %v1292_v13 = vpop.f32.mrb[47].mxu1 }
 0x726   :  { %v1780_v55 = vmul.f32 -1.442695, %v1295_v37  ;;  %v1781_v56 = vmul.f32 -1.442695, %v1297_v39  ;;  %v1785_v37 = vld [vmem:[%s2968_s7] ss:$0 sm:$0xff] }
 0x727   :  { %2001 = vpow2.f32 %v1779_v53 }
 0x728   :  { %2003 = vpow2.f32 %v1780_v55 }
 0x729   :  { %2005 = vpow2.f32 %v1781_v56 }
 0x72a   :  { %2007 = vtanh.f32 %v1296_v33 }
 0x731   :  { %v2002_v8 = vpop.eup %2001 }
 0x732   :  { %v2004_v10 = vpop.eup %2003  ;;  %v1301_v14 = vadd.f32 1.0, %v2002_v8 }
 0x733   :  { %v1307_v11 = vadd.f32 1.0, %v2004_v10  ;;  %v2006_v12 = vpop.eup %2005 }
 0x734   :  { %2009 = vrcp.f32 %v1301_v14  ;;  %v2008_v42 = vpop.eup %2007  ;;  %v1314_v18 = vadd.f32 1.0, %v2006_v12 }
 0x735   :  { %2011 = vrcp.f32 %v1307_v11 }
 0x736   :  { %2013 = vrcp.f32 %v1314_v18 }
 0x73e   :  { %v2010_v15 = vpop.eup %2009 }
 0x73f   :  { %v2012_v7 = vpop.eup %2011  ;;  %v1318_v17 = vmul.f32 %v2010_v15, %v2008_v42 }
 0x740   :  { %v1317_v19 = vmul.f32 %v2012_v7, %v2806_v57  ;;  %v2014_v22 = vpop.eup %2013  ;;  %v1901_v57 = vld [vmem:[%s2967_s6 + $0x38] sm:$0xff]  }
 0x742   :  { %v2879_v20 = vadd.f32 %v1318_v17, %v1317_v19 }
 0x744   :  { %2015 = vtanh.f32 %v2879_v20 }
 0x74e   :  { %v2016_v23 = vpop.eup %2015 }
 0x74f   :  { %v1321_v59 = vmul.f32 %v2016_v23, %v2014_v22 }
 0x751   :  { %v1322_v24 = vpack.c.bf16 %v1321_v59, %v1321_v59 }
 0x753   :  { %1324 = vst [vmem:[#allocation3 + $0x18] sm:$0xf] %v1322_v24  ;;  %1363 = vmatmul.mubr.bf16.vlgmr.msra.gmra.mrb[40].mxu0 %v1322_v24  ;;  %1404 = vmatmul.mubr.bf16.vlgmr.msra.gmra.mrb[48].mxu1 %v1322_v24 }
 0x754   :  { %1811 = vmatpush3.bf16.msra.mxu0 %v1893_v28  ;;  %1826 = vmatprep.mubr.bf16.mxu0 %v1894_v2 }
 0x755   :  { %1812 = vmatprep.subr.bf16.mxu0 %v1895_v60 }
 0x758   :  { %1813 = vmatpush3.bf16.msra.mxu0 %v1895_v60 }
 0x759   :  { %1814 = vmatprep.subr.bf16.mxu0 %v1896_v52 }
 0x75c   :  { %1815 = vmatpush3.bf16.msra.mxu0 %v1896_v52 }
 0x75d   :  { %1816 = vmatprep.subr.bf16.mxu0 %v1897_v0 }
 0x760   :  { %1817 = vmatpush3.bf16.msra.mxu0 %v1897_v0 }
 0x761   :  { %1818 = vmatprep.subr.bf16.mxu0 %v1898_v48 }
 0x764   :  { %1819 = vmatpush3.bf16.msra.mxu0 %v1898_v48 }
 0x765   :  { %1820 = vmatprep.subr.bf16.mxu0 %v1899_v46 }
 0x768   :  { %1821 = vmatpush3.bf16.msra.mxu0 %v1899_v46 }
 0x769   :  { %1822 = vmatprep.subr.bf16.mxu0 %v1900_v26 }
 0x76c   :  { %1823 = vmatpush3.bf16.msra.mxu0 %v1900_v26 }
 0x76d   :  { %1824 = vmatprep.subr.bf16.mxu0 %v1901_v57 }
 0x770   :  { %1825 = vmatpush3.bf16.msra.mxu0 %v1901_v57 }
 0x773   :  { %1827 = vmatmul.mubr.bf16.vlgmr.msra.gmra.mrb[44].mxu0 %v1902_v21 }
 0x774   :  { %1830 = vmatprep.mubr.bf16.mxu0 %v1903_v49 }
 0x826   :  { %v1364_v4 = vpop.f32.mrb[40].mxu0  ;;  %v1405_v61 = vpop.f32.mrb[48].mxu1 }
 0x827   :  { %v1412_v1 = vadd.f32 %v1364_v4, %v2503_v16  ;;  %v1414_v25 = vadd.f32 %v1405_v61, %v3003_v45  ;;  %v1366_v27 = vpop.f32.mrb[41].mxu0  ;;  %v1407_v63 = vpop.f32.mrb[49].mxu1 }
 0x828   :  { %v1413_v54 = vadd.f32 %v1366_v27, %v2505_v9  ;;  %v1415_v51 = vadd.f32 %v1407_v63, %v3004_v50  ;;  %v1368_v44 = vpop.f32.mrb[42].mxu0  ;;  %v1409_v3 = vpop.f32.mrb[50].mxu1 }
 0x829   :  { %v1782_v62 = vmul.f32 -1.442695, %v1412_v1  ;;  %v1369_v43 = vpop.f32.mrb[43].mxu0  ;;  %v1410_v5 = vpop.f32.mrb[51].mxu1 }
 0x82a   :  { %v1783_v6 = vmul.f32 -1.442695, %v1413_v54  ;;  %v1784_v58 = vmul.f32 -1.442695, %v1415_v51 }
 0x82b   :  { %2017 = vpow2.f32 %v1782_v62 }
 0x82c   :  { %2019 = vpow2.f32 %v1783_v6 }
 0x82d   :  { %2021 = vpow2.f32 %v1784_v58 }
 0x82e   :  { %2023 = vtanh.f32 %v1414_v25 }
 0x835   :  { %v2018_v28 = vpop.eup %2017 }
 0x836   :  { %v2020_v29 = vpop.eup %2019  ;;  %v1419_v16 = vadd.f32 1.0, %v2018_v28 }
 0x837   :  { %v1425_v30 = vadd.f32 1.0, %v2020_v29  ;;  %v2022_v9 = vpop.eup %2021 }
 0x838   :  { %2025 = vrcp.f32 %v1419_v16  ;;  %v2024_v31 = vpop.eup %2023  ;;  %v1432_v35 = vadd.f32 1.0, %v2022_v9 }
 0x839   :  { %2027 = vrcp.f32 %v1425_v30 }
 0x83a   :  { %2029 = vrcp.f32 %v1432_v35 }
 0x842   :  { %v2026_v32 = vpop.eup %2025 }
 0x843   :  { %v2028_v33 = vpop.eup %2027  ;;  %v1436_v34 = vmul.f32 %v2026_v32, %v2024_v31 }
 0x844   :  { %v1435_v36 = vmul.f32 %v2028_v33, %v2879_v20  ;;  %v2030_v8 = vpop.eup %2029 }
 0x846   :  { %v1437_v38 = vadd.f32 %v1436_v34, %v1435_v36  ;;  %v1828_v39 = vpop.f32.mrb[44].mxu0 }
 0x847   :  { %v1591_v40 = vadd.f32 %v1828_v39, %v1785_v37  ;;  %v1582_v47 = vpop.f32.mrb[45].mxu0 }
 0x848   :  { %2031 = vtanh.f32 %v1437_v38  ;;  %1444 = vst [vmem:[%s2969_s10] sm:$0xff] %v1437_v38  ;;  %v1583_v53 = vadd.f32 %v1785_v37, %v1582_v47  ;;  %v1829_v41 = vpop.f32.mrb[46].mxu0 }
 0x849   :  { %1617 = vmax.xlane.f32.xlu1 %v1591_v40  ;;  %v1585_v13 = vpop.f32.mrb[47].mxu0  ;;  %v1594_v55 = vadd.f32 %v1829_v41, %v1785_v37 }
 0x84a   :  { %1613 = vmax.xlane.f32.xlu0 %v1583_v53  ;;  %v1586_v56 = vadd.f32 %v1785_v37, %v1585_v13 }
 0x84d   :  { %1619 = vmax.xlane.f32.xlu1 %v1594_v55 }
 0x84e   :  { %1615 = vmax.xlane.f32.xlu0 %v1586_v56 }
 0x852   :  { %v2032_v10 = vpop.eup %2031 }
 0x853   :  { %v1439_v14 = vmul.f32 %v2032_v10, %v2030_v8 }
 0x855   :  { %v1440_v11 = vpack.c.bf16 %v1439_v14, %v1439_v14  ;;  %1443 = vst [vmem:[%s2970_s9] sm:$0xff] %v1439_v14 }
 0x857   :  { %1442 = vst [vmem:[#allocation3 + $0x1c] sm:$0xf] %v1440_v11 }
 0x85e   :  { %v1904_v12 = vld [vmem:[#allocation3 + $0x18] sm:$0xff]  }
 0x85f   :  { %1831 = vmatmul.mubr.bf16.gmra.mrb[48].mxu0 %v1904_v12 }
 0x8d6   :  { %v1618_v15 = vpop.xlane.xlu1 %1617 }
 0x8d7   :  { %v1614_v42 = vpop.xlane.xlu0 %1613  ;;  %v2921_v20 = vsub.f32 %v1591_v40, %v1618_v15 }
 0x8d8   :  { %v2917_v17 = vsub.f32 %v1583_v53, %v1614_v42 }
 0x8d9   :  { %v1641_v60 = vmul.f32 1.442695, %v2921_v20 }
 0x8da   :  { %v1620_v19 = vpop.xlane.xlu1 %1619  ;;  %v1637_v22 = vmul.f32 1.442695, %v2917_v17 }
 0x8db   :  { %v1616_v7 = vpop.xlane.xlu0 %1615  ;;  %v2924_v23 = vsub.f32 %v1594_v55, %v1620_v19 }
 0x8dc   :  { %v2919_v18 = vsub.f32 %v1586_v56, %v1616_v7  ;;  %2033 = vpow2.f32 %v1637_v22 }
 0x8dd   :  { %v1643_v48 = vmul.f32 1.442695, %v2924_v23 }
 0x8de   :  { %v1639_v59 = vmul.f32 1.442695, %v2919_v18 }
 0x8e0   :  { %2035 = vpow2.f32 %v1639_v59 }
 0x8e1   :  { %2037 = vpow2.f32 %v1641_v60 }
 0x8e2   :  { %2039 = vpow2.f32 %v1643_v48 }
 0x8e6   :  { %v2034_v49 = vpop.eup %2033 }
 0x8ea   :  { %v2036_v4 = vpop.eup %2035 }
 0x8eb   :  { %v2038_v61 = vpop.eup %2037 }
 0x8ec   :  { %v2040_v1 = vpop.eup %2039 }
 0x932   :  { %v1832_v24 = vpop.f32.mrb[48].mxu0 }
 0x933   :  { %v1598_v2 = vpop.f32.mrb[49].mxu0  ;;  %v1607_v57 = vadd.f32 %v1832_v24, %v1785_v37 }
 0x934   :  { %v1599_v52 = vadd.f32 %v1785_v37, %v1598_v2  ;;  %v1833_v0 = vpop.f32.mrb[50].mxu0 }
 0x935   :  { %v1601_v46 = vpop.f32.mrb[51].mxu0  ;;  %v1610_v21 = vadd.f32 %v1833_v0, %v1785_v37 }
 0x936   :  { %v1602_v26 = vadd.f32 %v1785_v37, %v1601_v46  ;;  %1621 = vmax.xlane.f32.xlu0 %v1599_v52 }
 0x938   :  { %1623 = vmax.xlane.f32.xlu1 %v1602_v26 }
 0x93a   :  { %1625 = vmax.xlane.f32.xlu0 %v1607_v57 }
 0x93c   :  { %1627 = vmax.xlane.f32.xlu1 %v1610_v21 }
 0x93e   :  { %1653 = vadd.xlane.f32.xlu0 %v2034_v49 }
 0x940   :  { %1655 = vadd.xlane.f32.xlu1 %v2036_v4 }
 0x942   :  { %1657 = vadd.xlane.f32.xlu0 %v2038_v61 }
 0x944   :  { %1659 = vadd.xlane.f32.xlu1 %v2040_v1 }
 0x9c3   :  { %v1622_v45 = vpop.xlane.xlu0 %1621 }
 0x9c4   :  { %v1633_v25 = vsub.f32 %v1599_v52, %v1622_v45 }
 0x9c5   :  { %v1624_v27 = vpop.xlane.xlu1 %1623 }
 0x9c6   :  { %v1645_v63 = vmul.f32 1.442695, %v1633_v25  ;;  %v2929_v54 = vsub.f32 %v1602_v26, %v1624_v27 }
 0x9c7   :  { %v1626_v50 = vpop.xlane.xlu0 %1625 }
 0x9c8   :  { %2041 = vpow2.f32 %v1645_v63  ;;  %v1647_v51 = vmul.f32 1.442695, %v2929_v54  ;;  %v1635_v44 = vsub.f32 %v1607_v57, %v1626_v50 }
 0x9c9   :  { %v1628_v3 = vpop.xlane.xlu1 %1627 }
 0x9ca   :  { %2043 = vpow2.f32 %v1647_v51  ;;  %v1649_v62 = vmul.f32 1.442695, %v1635_v44  ;;  %v1636_v43 = vsub.f32 %v1610_v21, %v1628_v3 }
 0x9cb   :  { %v1654_v5 = vpop.xlane.xlu0 %1653 }
 0x9cc   :  { %2045 = vpow2.f32 %v1649_v62  ;;  %v1651_v6 = vmul.f32 1.442695, %v1636_v43 }
 0x9cd   :  { %2047 = vlog2.f32 %v1654_v5  ;;  %v1656_v58 = vpop.xlane.xlu1 %1655 }
 0x9ce   :  { %2049 = vpow2.f32 %v1651_v6 }
 0x9cf   :  { %2051 = vlog2.f32 %v1656_v58  ;;  %v1658_v28 = vpop.xlane.xlu0 %1657 }
 0x9d0   :  { %2053 = vlog2.f32 %v1658_v28 }
 0x9d1   :  { %v1660_v29 = vpop.xlane.xlu1 %1659 }
 0x9d2   :  { %v2042_v16 = vpop.eup %2041  ;;  %2055 = vlog2.f32 %v1660_v29 }
 0x9d3   :  { %1661 = vadd.xlane.f32.xlu0 %v2042_v16 }
 0x9d4   :  { %v2044_v30 = vpop.eup %2043 }
 0x9d5   :  { %1663 = vadd.xlane.f32.xlu1 %v2044_v30 }
 0x9d6   :  { %v2046_v9 = vpop.eup %2045 }
 0x9d7   :  { %v2048_v31 = vpop.eup %2047  ;;  %1665 = vadd.xlane.f32.xlu0 %v2046_v9 }
 0x9d8   :  { %v2050_v32 = vpop.eup %2049  ;;  %v1670_v33 = vmul.f32 0.6931472, %v2048_v31 }
 0x9d9   :  { %v2052_v34 = vpop.eup %2051  ;;  %1667 = vadd.xlane.f32.xlu1 %v2050_v32 }
 0x9da   :  { %v2054_v35 = vpop.eup %2053  ;;  %v1685_v36 = vsub.f32 %v2917_v17, %v1670_v33  ;;  %v1672_v37 = vmul.f32 0.6931472, %v2052_v34 }
 0x9db   :  { %v1674_v38 = vmul.f32 0.6931472, %v2054_v35 }
 0x9dc   :  { %v2056_v39 = vpop.eup %2055  ;;  %1693 = vst [vmem:[%s2971_s8] sm:$0xff] %v1685_v36  ;;  %v1686_v40 = vsub.f32 %v2919_v18, %v1672_v37 }
 0x9dd   :  { %v1687_v47 = vsub.f32 %v2921_v20, %v1674_v38  ;;  %v1676_v53 = vmul.f32 0.6931472, %v2056_v39 }
 0x9de   :  { %1694 = vst [vmem:[%s2971_s8 + $0x8] sm:$0xff] %v1686_v40 }
 0x9df   :  { %1695 = vst [vmem:[%s2971_s8 + $0x10] sm:$0xff] %v1687_v47  ;;  %v1688_v41 = vsub.f32 %v2924_v23, %v1676_v53 }
 0x9e1   :  { %1696 = vst [vmem:[%s2971_s8 + $0x18] sm:$0xff] %v1688_v41 }
 0xa60   :  { %v1662_v13 = vpop.xlane.xlu0 %1661 }
 0xa61   :  { %2057 = vlog2.f32 %v1662_v13 }
 0xa62   :  { %v1664_v55 = vpop.xlane.xlu1 %1663 }
 0xa63   :  { %2059 = vlog2.f32 %v1664_v55 }
 0xa64   :  { %v1666_v56 = vpop.xlane.xlu0 %1665 }
 0xa65   :  { %2061 = vlog2.f32 %v1666_v56 }
 0xa66   :  { %v1668_v8 = vpop.xlane.xlu1 %1667 }
 0xa67   :  { %2063 = vlog2.f32 %v1668_v8 }
 0xa6b   :  { %v2058_v10 = vpop.eup %2057 }
 0xa6c   :  { %v1678_v14 = vmul.f32 0.6931472, %v2058_v10 }
 0xa6d   :  { %v2060_v11 = vpop.eup %2059 }
 0xa6e   :  { %v1689_v12 = vsub.f32 %v1633_v25, %v1678_v14  ;;  %v1680_v42 = vmul.f32 0.6931472, %v2060_v11 }
 0xa6f   :  { %v2062_v15 = vpop.eup %2061 }
 0xa70   :  { %1697 = vst [vmem:[%s2971_s8 + $0x20] sm:$0xff] %v1689_v12  ;;  %v1690_v7 = vsub.f32 %v2929_v54, %v1680_v42  ;;  %v1682_v17 = vmul.f32 0.6931472, %v2062_v15 }
 0xa71   :  { %v2064_v18 = vpop.eup %2063 }
 0xa72   :  { %1698 = vst [vmem:[%s2971_s8 + $0x28] sm:$0xff] %v1690_v7  ;;  %v1691_v19 = vsub.f32 %v1635_v44, %v1682_v17  ;;  %v1684_v20 = vmul.f32 0.6931472, %v2064_v18 }
 0xa74   :  { %1699 = vst [vmem:[%s2971_s8 + $0x30] sm:$0xff] %v1691_v19  ;;  %v1692_v22 = vsub.f32 %v1636_v43, %v1684_v20 }
 0xa76   :  { %1700 = vst [vmem:[%s2971_s8 + $0x38] sm:$0xff] %v1692_v22 }

</bundles_post_ra>
